<compile_context>
chip_gen: v7x
topology: tpu7x:2x2x1
jax: 0.10.0
libtpu: 0.0.40
codegen_flags: <defaults>
</compile_context>

<pallas_src>
import jax
import jax.numpy as jnp
from jax.experimental import pallas as pl
from jax.experimental.pallas import tpu as pltpu

KP_DIM = 26       # keypoint feature dim   (b, 26, 1) in the PyTorch module
PARAM_DIM = 11    # parameter feature dim  (b, 11, 1)
LATENT_DIM = 8    # CVAE latent dim (synthetic)
HIDDEN = 64       # decoder hidden width (synthetic)

K1_PAD = 64       # padded fused layer-1 contraction dim (45 / 34 -> 64)
H_PAD = 128       # lane-padded hidden / output width
W_SLAB_ROWS = 2 * K1_PAD + 5 * H_PAD   # 768
TILE_B = 256      # batch tile (fits easily in scoped VMEM on v5e/v6e/v7x)

# Row layout of the packed weight slab (all lane dims padded to 128):
#   [  0: 64]  W_A1   fused (z_a | dk | sp) -> hidden
#   [ 64:128]  W_B1   fused (z_b | tk)      -> hidden
#   [128:256]  W_Bpp  param_pred(128-padded) -> hidden
#   [256:384]  W_A2   hidden -> hidden
#   [384:512]  W_A3   hidden -> param (11, padded to 128)
#   [512:640]  W_B2   hidden -> hidden
#   [640:768]  W_B3   hidden -> keypoints (26, padded to 128)
# Bias slab rows: 0=a_b1, 1=a_b2, 2=a_b3, 3=b_b1, 4=b_b2, 5=b_b3 (rows 6,7 zero)


def ek_pkvae_kernel(xa_ref, xb_ref, w_ref, b_ref, out_ref):
    f32 = jnp.float32
    bf16 = jnp.bfloat16

    w_a1 = w_ref[0:64, :]
    w_b1 = w_ref[64:128, :]
    w_bpp = w_ref[128:256, :]
    w_a2 = w_ref[256:384, :]
    w_a3 = w_ref[384:512, :]
    w_b2 = w_ref[512:640, :]
    w_b3 = w_ref[640:768, :]

    b_a1 = b_ref[0:1, :]
    b_a2 = b_ref[1:2, :]
    b_a3 = b_ref[2:3, :]
    b_b1 = b_ref[3:4, :]
    b_b2 = b_ref[4:5, :]
    b_b3 = b_ref[5:6, :]

    # ---- target_param_pred = modelA.sample(cat(sk - tk, sp)) ----------------
    h = jnp.dot(xa_ref[...], w_a1, preferred_element_type=f32) + b_a1
    h = jnp.maximum(h, 0.0)
    h = jnp.dot(h.astype(bf16), w_a2, preferred_element_type=f32) + b_a2
    h = jnp.maximum(h, 0.0)
    param_pred = jnp.dot(h.astype(bf16), w_a3, preferred_element_type=f32) + b_a3
    # (TB, 128); only lanes [0:11] are non-zero (padded weight cols / bias are 0)

    # ---- target_point_pred = modelB.sample(cat(param_pred, tk)) -------------
    g = (jnp.dot(xb_ref[...], w_b1, preferred_element_type=f32)
         + jnp.dot(param_pred.astype(bf16), w_bpp, preferred_element_type=f32)
         + b_b1)
    g = jnp.maximum(g, 0.0)
    g = jnp.dot(g.astype(bf16), w_b2, preferred_element_type=f32) + b_b2
    g = jnp.maximum(g, 0.0)
    point_pred = jnp.dot(g.astype(bf16), w_b3, preferred_element_type=f32) + b_b3
    # (TB, 128); only lanes [0:26] are non-zero

    # Lane-dense 128-aligned stores into one (TB, 256) output slab.
    out_ref[:, 0:H_PAD] = param_pred
    out_ref[:, H_PAD:2 * H_PAD] = point_pred


def make_params(key):
    """Deterministic synthetic (unpadded, f32) weights for both CVAE decoders."""
    def dense(k, shape, scale=0.05):
        return scale * jax.random.normal(k, shape, dtype=jnp.float32)

    ks = jax.random.split(key, 16)
    return dict(
        # modelA decoder: in = latent(8) + dk(26) + sp(11) -> 64 -> 64 -> 11
        a_wz=dense(ks[0], (LATENT_DIM, HIDDEN)),
        a_wdk=dense(ks[1], (KP_DIM, HIDDEN)),
        a_wsp=dense(ks[2], (PARAM_DIM, HIDDEN)),
        a_b1=dense(ks[3], (HIDDEN,), 0.02),
        a_w2=dense(ks[4], (HIDDEN, HIDDEN)),
        a_b2=dense(ks[5], (HIDDEN,), 0.02),
        a_w3=dense(ks[6], (HIDDEN, PARAM_DIM)),
        a_b3=dense(ks[7], (PARAM_DIM,), 0.02),
        # modelB decoder: in = latent(8) + param_pred(11) + tk(26) -> 64 -> 64 -> 26
        b_wz=dense(ks[8], (LATENT_DIM, HIDDEN)),
        b_wpp=dense(ks[9], (PARAM_DIM, HIDDEN)),
        b_wtk=dense(ks[10], (KP_DIM, HIDDEN)),
        b_b1=dense(ks[11], (HIDDEN,), 0.02),
        b_w2=dense(ks[12], (HIDDEN, HIDDEN)),
        b_b2=dense(ks[13], (HIDDEN,), 0.02),
        b_w3=dense(ks[14], (HIDDEN, KP_DIM)),
        b_b3=dense(ks[15], (KP_DIM,), 0.02),
    )


def pack_params(raw):
    """Pack all weights into one padded bf16 slab and all biases into one f32 slab."""
    def pad2(w):
        out = jnp.zeros((H_PAD, H_PAD), jnp.float32)
        return out.at[: w.shape[0], : w.shape[1]].set(w)

    w_a1 = jnp.zeros((K1_PAD, H_PAD), jnp.float32)
    w_a1 = w_a1.at[0:LATENT_DIM, 0:HIDDEN].set(raw["a_wz"])
    w_a1 = w_a1.at[LATENT_DIM:LATENT_DIM + KP_DIM, 0:HIDDEN].set(raw["a_wdk"])
    w_a1 = w_a1.at[LATENT_DIM + KP_DIM:LATENT_DIM + KP_DIM + PARAM_DIM,
                   0:HIDDEN].set(raw["a_wsp"])

    w_b1 = jnp.zeros((K1_PAD, H_PAD), jnp.float32)
    w_b1 = w_b1.at[0:LATENT_DIM, 0:HIDDEN].set(raw["b_wz"])
    w_b1 = w_b1.at[LATENT_DIM:LATENT_DIM + KP_DIM, 0:HIDDEN].set(raw["b_wtk"])

    w_slab = jnp.concatenate(
        [w_a1, w_b1, pad2(raw["b_wpp"]), pad2(raw["a_w2"]), pad2(raw["a_w3"]),
         pad2(raw["b_w2"]), pad2(raw["b_w3"])], axis=0).astype(jnp.bfloat16)

    b_slab = jnp.zeros((8, H_PAD), jnp.float32)
    b_slab = b_slab.at[0, 0:HIDDEN].set(raw["a_b1"])
    b_slab = b_slab.at[1, 0:HIDDEN].set(raw["a_b2"])
    b_slab = b_slab.at[2, 0:PARAM_DIM].set(raw["a_b3"])
    b_slab = b_slab.at[3, 0:HIDDEN].set(raw["b_b1"])
    b_slab = b_slab.at[4, 0:HIDDEN].set(raw["b_b2"])
    b_slab = b_slab.at[5, 0:KP_DIM].set(raw["b_b3"])
    return dict(w_slab=w_slab, b_slab=b_slab)


def ek_pkvae_forward(source_keypoint, target_keypoint, source_param,
                     z_a, z_b, packed, tile_b=TILE_B):
    """
    source_keypoint: (b, 26, 1)   target_keypoint: (b, 26, 1)
    source_param:    (b, 11, 1)   z_a/z_b: (b, 8) latent samples
    returns (target_param_pred (b,11,1), target_point_pred (b,26,1))
    """
    b = source_keypoint.shape[0]
    sk = source_keypoint[..., 0].astype(jnp.float32)   # (b, 26)
    tk = target_keypoint[..., 0].astype(jnp.float32)   # (b, 26)
    sp = source_param[..., 0].astype(jnp.float32)      # (b, 11)
    dk = sk - tk

    # Fused, lane-padded layer-1 inputs (the torch.cat realized host-side).
    xa = jnp.zeros((b, K1_PAD), jnp.float32)
    xa = xa.at[:, 0:LATENT_DIM].set(z_a)
    xa = xa.at[:, LATENT_DIM:LATENT_DIM + KP_DIM].set(dk)
    xa = xa.at[:, LATENT_DIM + KP_DIM:LATENT_DIM + KP_DIM + PARAM_DIM].set(sp)

    xb = jnp.zeros((b, K1_PAD), jnp.float32)
    xb = xb.at[:, 0:LATENT_DIM].set(z_b)
    xb = xb.at[:, LATENT_DIM:LATENT_DIM + KP_DIM].set(tk)

    # Pad batch to a tile multiple (also satisfies the (8,128) sublane rule).
    b_pad = pl.cdiv(b, tile_b) * tile_b
    if b_pad != b:
        xa = jnp.pad(xa, ((0, b_pad - b), (0, 0)))
        xb = jnp.pad(xb, ((0, b_pad - b), (0, 0)))
    xa = xa.astype(jnp.bfloat16)
    xb = xb.astype(jnp.bfloat16)

    w_slab = packed["w_slab"]   # (768, 128) bf16
    b_slab = packed["b_slab"]   # (8, 128)   f32

    grid = (b_pad // tile_b,)
    out = pl.pallas_call(
        ek_pkvae_kernel,
        out_shape=jax.ShapeDtypeStruct((b_pad, 2 * H_PAD), jnp.float32),
        grid=grid,
        in_specs=[
            pl.BlockSpec((tile_b, K1_PAD), lambda i: (i, 0)),        # xa tile
            pl.BlockSpec((tile_b, K1_PAD), lambda i: (i, 0)),        # xb tile
            pl.BlockSpec((W_SLAB_ROWS, H_PAD), lambda i: (0, 0)),    # weights (resident)
            pl.BlockSpec((8, H_PAD), lambda i: (0, 0)),              # biases (resident)
        ],
        out_specs=pl.BlockSpec((tile_b, 2 * H_PAD), lambda i: (i, 0)),
        compiler_params=pltpu.CompilerParams(
            dimension_semantics=("parallel",)),
    )(xa, xb, w_slab, b_slab)

    param_pred = out[:b, 0:PARAM_DIM][..., None]                 # (b, 11, 1)
    point_pred = out[:b, H_PAD:H_PAD + KP_DIM][..., None]        # (b, 26, 1)
    return param_pred, point_pred


def ek_pkvae_reference(sk, tk, sp, z_a, z_b, raw):
    """Pure-JAX f32 reference of the same synthetic decoders."""
    dk = sk - tk
    h = jax.nn.relu(z_a @ raw["a_wz"] + dk @ raw["a_wdk"] + sp @ raw["a_wsp"]
                    + raw["a_b1"])
    h = jax.nn.relu(h @ raw["a_w2"] + raw["a_b2"])
    param_pred = h @ raw["a_w3"] + raw["a_b3"]

    g = jax.nn.relu(z_b @ raw["b_wz"] + param_pred @ raw["b_wpp"]
                    + tk @ raw["b_wtk"] + raw["b_b1"])
    g = jax.nn.relu(g @ raw["b_w2"] + raw["b_b2"])
    point_pred = g @ raw["b_w3"] + raw["b_b3"]
    return param_pred, point_pred


if __name__ == "__main__":
    key = jax.random.PRNGKey(0)
    k_in, k_par, k_za, k_zb = jax.random.split(key, 4)
    k_sk, k_tk, k_sp = jax.random.split(k_in, 3)

    batch = 2
    source_keypoint = jax.random.normal(k_sk, (batch, KP_DIM, 1), dtype=jnp.float32)
    target_keypoint = jax.random.normal(k_tk, (batch, KP_DIM, 1), dtype=jnp.float32)
    source_param = jax.random.normal(k_sp, (batch, PARAM_DIM, 1), dtype=jnp.float32)

    # deterministic CVAE latent samples (the "sample" in modelA/modelB.sample)
    z_a = jax.random.normal(k_za, (batch, LATENT_DIM), dtype=jnp.float32)
    z_b = jax.random.normal(k_zb, (batch, LATENT_DIM), dtype=jnp.float32)

    raw = make_params(k_par)
    packed = pack_params(raw)

    fwd = jax.jit(ek_pkvae_forward)
    target_param_pred, target_point_pred = fwd(
        source_keypoint, target_keypoint, source_param, z_a, z_b, packed)
    jax.block_until_ready((target_param_pred, target_point_pred))

    assert target_param_pred.shape == (batch, PARAM_DIM, 1)
    assert target_point_pred.shape == (batch, KP_DIM, 1)

    # Validate against pure-JAX f32 reference (bf16 matmul path -> loose tolerance).
    ref_param, ref_point = ek_pkvae_reference(
        source_keypoint[..., 0], target_keypoint[..., 0], source_param[..., 0],
        z_a, z_b, raw)
    assert jnp.allclose(target_param_pred[..., 0], ref_param, atol=2e-2, rtol=2e-2)
    assert jnp.allclose(target_point_pred[..., 0], ref_point, atol=2e-2, rtol=2e-2)

    print("KERNEL_OK")
</pallas_src>

<mosaic_0001>
module attributes {stable_mosaic.version = 11 : i64} {
  func.func @ek_pkvae_kernel(%arg0: i32, %arg1: memref<256x64xbf16, #tpu.memory_space<vmem>>, %arg2: memref<256x64xbf16, #tpu.memory_space<vmem>>, %arg3: memref<768x128xbf16, #tpu.memory_space<vmem>>, %arg4: memref<8x128xf32, #tpu.memory_space<vmem>>, %arg5: memref<256x256xf32, #tpu.memory_space<vmem>>) attributes {dimension_semantics = [#tpu.dimension_semantics<parallel>], iteration_bounds = array<i64: 1>, scalar_prefetch = 0 : i64, scratch_operands = 0 : i64, tpu.core_type = #tpu.core_type<tc>, window_params = [{transform_indices = @transform_0, window_bounds = array<i64: 256, 64>}, {transform_indices = @transform_1, window_bounds = array<i64: 256, 64>}, {pipeline_mode = #tpu.pipeline_mode<synchronous>, transform_indices = @transform_2, window_bounds = array<i64: 768, 128>}, {pipeline_mode = #tpu.pipeline_mode<synchronous>, transform_indices = @transform_3, window_bounds = array<i64: 8, 128>}, {transform_indices = @transform_4, window_bounds = array<i64: 256, 256>}]} {
    %c0 = arith.constant 0 : index
    %c0_0 = arith.constant 0 : index
    %0 = vector.load %arg3[%c0, %c0_0] : memref<768x128xbf16, #tpu.memory_space<vmem>>, vector<64x128xbf16>
    %c64 = arith.constant 64 : index
    %c0_1 = arith.constant 0 : index
    %1 = vector.load %arg3[%c64, %c0_1] : memref<768x128xbf16, #tpu.memory_space<vmem>>, vector<64x128xbf16>
    %c128 = arith.constant 128 : index
    %c0_2 = arith.constant 0 : index
    %2 = vector.load %arg3[%c128, %c0_2] : memref<768x128xbf16, #tpu.memory_space<vmem>>, vector<128x128xbf16>
    %c256 = arith.constant 256 : index
    %c0_3 = arith.constant 0 : index
    %3 = vector.load %arg3[%c256, %c0_3] : memref<768x128xbf16, #tpu.memory_space<vmem>>, vector<128x128xbf16>
    %c384 = arith.constant 384 : index
    %c0_4 = arith.constant 0 : index
    %4 = vector.load %arg3[%c384, %c0_4] : memref<768x128xbf16, #tpu.memory_space<vmem>>, vector<128x128xbf16>
    %c512 = arith.constant 512 : index
    %c0_5 = arith.constant 0 : index
    %5 = vector.load %arg3[%c512, %c0_5] : memref<768x128xbf16, #tpu.memory_space<vmem>>, vector<128x128xbf16>
    %c640 = arith.constant 640 : index
    %c0_6 = arith.constant 0 : index
    %6 = vector.load %arg3[%c640, %c0_6] : memref<768x128xbf16, #tpu.memory_space<vmem>>, vector<128x128xbf16>
    %c0_7 = arith.constant 0 : index
    %c0_8 = arith.constant 0 : index
    %7 = vector.load %arg4[%c0_7, %c0_8] : memref<8x128xf32, #tpu.memory_space<vmem>>, vector<1x128xf32>
    %c1 = arith.constant 1 : index
    %c0_9 = arith.constant 0 : index
    %8 = vector.load %arg4[%c1, %c0_9] : memref<8x128xf32, #tpu.memory_space<vmem>>, vector<1x128xf32>
    %c2 = arith.constant 2 : index
    %c0_10 = arith.constant 0 : index
    %9 = vector.load %arg4[%c2, %c0_10] : memref<8x128xf32, #tpu.memory_space<vmem>>, vector<1x128xf32>
    %c3 = arith.constant 3 : index
    %c0_11 = arith.constant 0 : index
    %10 = vector.load %arg4[%c3, %c0_11] : memref<8x128xf32, #tpu.memory_space<vmem>>, vector<1x128xf32>
    %c4 = arith.constant 4 : index
    %c0_12 = arith.constant 0 : index
    %11 = vector.load %arg4[%c4, %c0_12] : memref<8x128xf32, #tpu.memory_space<vmem>>, vector<1x128xf32>
    %c5 = arith.constant 5 : index
    %c0_13 = arith.constant 0 : index
    %12 = vector.load %arg4[%c5, %c0_13] : memref<8x128xf32, #tpu.memory_space<vmem>>, vector<1x128xf32>
    %c0_14 = arith.constant 0 : index
    %c0_15 = arith.constant 0 : index
    %13 = vector.load %arg1[%c0_14, %c0_15] : memref<256x64xbf16, #tpu.memory_space<vmem>>, vector<256x64xbf16>
    %cst = arith.constant dense<0.000000e+00> : vector<256x128xf32>
    %14 = tpu.matmul %13, %0, %cst {dimension_numbers = #tpu.dot_dimension_numbers<[1], [0], [0], [1], [0, 0, 1, 1], [], []>} : vector<256x64xbf16>, vector<64x128xbf16>, vector<256x128xf32> -> vector<256x128xf32>
    %15 = vector.broadcast %7 : vector<1x128xf32> to vector<256x128xf32>
    %16 = arith.addf %14, %15 : vector<256x128xf32>
    %cst_16 = arith.constant 0.000000e+00 : f32
    %17 = vector.broadcast %cst_16 : f32 to vector<256x128xf32>
    %18 = arith.maximumf %16, %17 : vector<256x128xf32>
    %19 = arith.truncf %18 : vector<256x128xf32> to vector<256x128xbf16>
    %cst_17 = arith.constant dense<0.000000e+00> : vector<256x128xf32>
    %20 = tpu.matmul %19, %3, %cst_17 {dimension_numbers = #tpu.dot_dimension_numbers<[1], [0], [0], [1], [0, 0, 1, 1], [], []>} : vector<256x128xbf16>, vector<128x128xbf16>, vector<256x128xf32> -> vector<256x128xf32>
    %21 = vector.broadcast %8 : vector<1x128xf32> to vector<256x128xf32>
    %22 = arith.addf %20, %21 : vector<256x128xf32>
    %cst_18 = arith.constant 0.000000e+00 : f32
    %23 = vector.broadcast %cst_18 : f32 to vector<256x128xf32>
    %24 = arith.maximumf %22, %23 : vector<256x128xf32>
    %25 = arith.truncf %24 : vector<256x128xf32> to vector<256x128xbf16>
    %cst_19 = arith.constant dense<0.000000e+00> : vector<256x128xf32>
    %26 = tpu.matmul %25, %4, %cst_19 {dimension_numbers = #tpu.dot_dimension_numbers<[1], [0], [0], [1], [0, 0, 1, 1], [], []>} : vector<256x128xbf16>, vector<128x128xbf16>, vector<256x128xf32> -> vector<256x128xf32>
    %27 = vector.broadcast %9 : vector<1x128xf32> to vector<256x128xf32>
    %28 = arith.addf %26, %27 : vector<256x128xf32>
    %c0_20 = arith.constant 0 : index
    %c0_21 = arith.constant 0 : index
    %29 = vector.load %arg2[%c0_20, %c0_21] : memref<256x64xbf16, #tpu.memory_space<vmem>>, vector<256x64xbf16>
    %cst_22 = arith.constant dense<0.000000e+00> : vector<256x128xf32>
    %30 = tpu.matmul %29, %1, %cst_22 {dimension_numbers = #tpu.dot_dimension_numbers<[1], [0], [0], [1], [0, 0, 1, 1], [], []>} : vector<256x64xbf16>, vector<64x128xbf16>, vector<256x128xf32> -> vector<256x128xf32>
    %31 = arith.truncf %28 : vector<256x128xf32> to vector<256x128xbf16>
    %cst_23 = arith.constant dense<0.000000e+00> : vector<256x128xf32>
    %32 = tpu.matmul %31, %2, %cst_23 {dimension_numbers = #tpu.dot_dimension_numbers<[1], [0], [0], [1], [0, 0, 1, 1], [], []>} : vector<256x128xbf16>, vector<128x128xbf16>, vector<256x128xf32> -> vector<256x128xf32>
    %33 = arith.addf %30, %32 : vector<256x128xf32>
    %34 = vector.broadcast %10 : vector<1x128xf32> to vector<256x128xf32>
    %35 = arith.addf %33, %34 : vector<256x128xf32>
    %cst_24 = arith.constant 0.000000e+00 : f32
    %36 = vector.broadcast %cst_24 : f32 to vector<256x128xf32>
    %37 = arith.maximumf %35, %36 : vector<256x128xf32>
    %38 = arith.truncf %37 : vector<256x128xf32> to vector<256x128xbf16>
    %cst_25 = arith.constant dense<0.000000e+00> : vector<256x128xf32>
    %39 = tpu.matmul %38, %5, %cst_25 {dimension_numbers = #tpu.dot_dimension_numbers<[1], [0], [0], [1], [0, 0, 1, 1], [], []>} : vector<256x128xbf16>, vector<128x128xbf16>, vector<256x128xf32> -> vector<256x128xf32>
    %40 = vector.broadcast %11 : vector<1x128xf32> to vector<256x128xf32>
    %41 = arith.addf %39, %40 : vector<256x128xf32>
    %cst_26 = arith.constant 0.000000e+00 : f32
    %42 = vector.broadcast %cst_26 : f32 to vector<256x128xf32>
    %43 = arith.maximumf %41, %42 : vector<256x128xf32>
    %44 = arith.truncf %43 : vector<256x128xf32> to vector<256x128xbf16>
    %cst_27 = arith.constant dense<0.000000e+00> : vector<256x128xf32>
    %45 = tpu.matmul %44, %6, %cst_27 {dimension_numbers = #tpu.dot_dimension_numbers<[1], [0], [0], [1], [0, 0, 1, 1], [], []>} : vector<256x128xbf16>, vector<128x128xbf16>, vector<256x128xf32> -> vector<256x128xf32>
    %46 = vector.broadcast %12 : vector<1x128xf32> to vector<256x128xf32>
    %47 = arith.addf %45, %46 : vector<256x128xf32>
    %c0_28 = arith.constant 0 : index
    %c0_29 = arith.constant 0 : index
    %48 = vector.load %arg5[%c0_28, %c0_29] : memref<256x256xf32, #tpu.memory_space<vmem>>, vector<256x128xf32>
    tpu.vector_store %arg5[%c0_28, %c0_29], %28 {strides = array<i32>} : memref<256x256xf32, #tpu.memory_space<vmem>>, vector<256x128xf32>,
    %c0_30 = arith.constant 0 : index
    %c128_31 = arith.constant 128 : index
    %49 = vector.load %arg5[%c0_30, %c128_31] : memref<256x256xf32, #tpu.memory_space<vmem>>, vector<256x128xf32>
    tpu.vector_store %arg5[%c0_30, %c128_31], %47 {strides = array<i32>} : memref<256x256xf32, #tpu.memory_space<vmem>>, vector<256x128xf32>,
    return
  }
  func.func @transform_0(%arg0: i32) -> (i32, i32) {
    %c0_i32 = arith.constant 0 : i32
    %c0_i32_0 = arith.constant 0 : i32
    return %arg0, %c0_i32 : i32, i32
  }
  func.func @transform_1(%arg0: i32) -> (i32, i32) {
    %c0_i32 = arith.constant 0 : i32
    %c0_i32_0 = arith.constant 0 : i32
    return %arg0, %c0_i32 : i32, i32
  }
  func.func @transform_2(%arg0: i32) -> (i32, i32) {
    %c0_i32 = arith.constant 0 : i32
    %c0_i32_0 = arith.constant 0 : i32
    %c0_i32_1 = arith.constant 0 : i32
    return %c0_i32, %c0_i32_0 : i32, i32
  }
  func.func @transform_3(%arg0: i32) -> (i32, i32) {
    %c0_i32 = arith.constant 0 : i32
    %c0_i32_0 = arith.constant 0 : i32
    %c0_i32_1 = arith.constant 0 : i32
    return %c0_i32, %c0_i32_0 : i32, i32
  }
  func.func @transform_4(%arg0: i32) -> (i32, i32) {
    %c0_i32 = arith.constant 0 : i32
    %c0_i32_0 = arith.constant 0 : i32
    return %arg0, %c0_i32 : i32, i32
  }
}

</mosaic_0001>

<bundles_post_ra>
// kernel: ek_pkvae_forward.1
= control target key start
LH: loop header
LB: loop body
LE: loop exit
PB: predicated region body
PF: predicated region fallthrough
CT: control target
= control target key end

     0   :  { %9 = vsyncpa [#allocation3], 0  ;;  %s2948_s15 = smov [#allocation2]   ;;  %s3542_s0 = inlined_call_operand.vmem [shape: bf16[256,64], index: 0, kind: input, shape index: {}]   ;;  %s3543_s1 = inlined_call_operand.vmem [shape: bf16[256,64], index: 1, kind: input, shape index: {}]   ;;  %s3544_s2 = inlined_call_operand.hbm [shape: bf16[768,128], index: 2, kind: input, shape index: {}]   ;;  %s3545_s3 = inlined_call_operand.vmem [shape: f32[8,128], index: 3, kind: input, shape index: {}]   ;;  %s3546_s4 = inlined_call_operand.vmem [shape: f32[256,256], index: 4, kind: output, shape index: {}]  }
   0x1   :  { %s19_s16 = sshll.u32 %s2948_s15, 4  ;;  %s2924_s19 = scalar_lea.hbm %s3544_s2, 6144  ;;  %s20_s16 = int_to_ptr.vmem [resolvable:$true] %s19_s16 }
   0x2   :  { %p2925_p0 = scmp.ne.s32.totalorder %s3544_s2, %s2924_s19  ;;  %p2928_p1 = scmp.lt.u32.totalorder %s2924_s19, %s3544_s2 }
   0x4   :  { %p2930_p2 = pnand %p2928_p1, %p2925_p0 }
   0x6   :  { %2933 = shalt.err (!%p2930_p2)
}
   0x7   :  { %s2934_s24 = scalar_lea.vmem %s20_s16, 6144  ;;  %p2939_p4 = scmp.lt.s32.totalorder %s20_s16, %s20_s16 }
   0x8   :  { %p2935_p3 = scmp.ne.s32.totalorder %s20_s16, %s2934_s24  ;;  %p2940_p5 = scmp.lt.s32.totalorder %s2934_s24, %s2934_s24 }
   0xa   :  { %p2941_p6 = por %p2940_p5, %p2939_p4 }
   0xc   :  { %p2942_p7 = pnand %p2941_p6, %p2935_p3 }
   0xe   :  { %2945 = shalt.err (!%p2942_p7)
}
   0xf   :  { %s2949_s25 = smov 64   ;;  %s2950_s26 = smov 4  }
  0x10   :  { %25 = dma.hbm_to_vmem [thread:$0]  %s3544_s2, 6144, %s20_s16, [#allocation3], %s2949_s25, %s2949_s25, %s2950_s26  }
  0x11   :  { %2946 = dma.done.wait [#allocation3], 6144  }
  0x12   :  { %2947 = vsyncadd [#allocation3], 4294961152  ;;  %v2844_v0 = vld [vmem:[#allocation2] sm:$0xff]   ;;  %v2845_v1 = vld [vmem:[#allocation2 + $0x8] sm:$0xff]   ;;  %vm274_vm0 = vcmask 523264  }
  0x13   :  { %2481 = vmatprep.subr.bf16.mxu0 %v2844_v0  ;;  %2801 = vmatprep.subr.bf16.mxu1 %v2844_v0  ;;  %v2846_v2 = vld [vmem:[#allocation2 + $0x10] sm:$0xff]   ;;  %v2848_v3 = vld [vmem:[%s3542_s0] sm:$0xff]   ;;  %v2847_v4 = vld [vmem:[#allocation2 + $0x18] sm:$0xff]  }
  0x14   :  { %2482 = vmatpush3.bf16.msra.mxu0 %v2844_v0  ;;  %2805 = vmatpush3.bf16.msra.mxu1 %v2844_v0  ;;  %v2849_v5 = vld [vmem:[%s3542_s0 + $0x8] sm:$0xff]   ;;  %v2856_v6 = vld [vmem:[%s3542_s0 + $0x40] sm:$0xff]   ;;  %v2850_v7 = vld [vmem:[%s3542_s0 + $0x10] sm:$0xff]  }
  0x15   :  { %2483 = vmatprep.subr.bf16.mxu0 %v2845_v1  ;;  %2802 = vmatprep.subr.bf16.mxu1 %v2845_v1  ;;  %v2857_v8 = vld [vmem:[%s3542_s0 + $0x48] sm:$0xff]   ;;  %v2858_v9 = vld [vmem:[%s3542_s0 + $0x50] sm:$0xff]   ;;  %v2851_v10 = vld [vmem:[%s3542_s0 + $0x18] sm:$0xff]  }
  0x16   :  { %2489 = vmatprep.mubr.msk.bf16.mxu0 %vm274_vm0, %v2848_v3  ;;  %2505 = vmatprep.mubr.msk.bf16.mxu1 %vm274_vm0, %v2856_v6  ;;  %v2864_v11 = vld [vmem:[#allocation2 + $0x80] sm:$0xff]   ;;  %v2865_v13 = vld [vmem:[#allocation2 + $0x88] sm:$0xff]   ;;  %v2859_v14 = vld [vmem:[%s3542_s0 + $0x58] sm:$0xff]  }
  0x17   :  { %v2852_v12 = vld [vmem:[%s3542_s0 + $0x20] sm:$0xff]   ;;  %v2866_v16 = vld [vmem:[#allocation2 + $0x90] sm:$0xff]   ;;  %v2867_v17 = vld [vmem:[#allocation2 + $0x98] sm:$0xff]  }
  0x18   :  { %2484 = vmatpush3.bf16.msra.mxu0 %v2845_v1  ;;  %2806 = vmatpush3.bf16.msra.mxu1 %v2845_v1  ;;  %v2860_v15 = vld [vmem:[%s3542_s0 + $0x60] sm:$0xff]   ;;  %v2853_v18 = vld [vmem:[%s3542_s0 + $0x28] sm:$0xff]   ;;  %v2854_v20 = vld [vmem:[%s3542_s0 + $0x30] sm:$0xff]  }
  0x19   :  { %2485 = vmatprep.subr.bf16.mxu0 %v2846_v2  ;;  %2803 = vmatprep.subr.bf16.mxu1 %v2846_v2  ;;  %v2861_v19 = vld [vmem:[%s3542_s0 + $0x68] sm:$0xff]   ;;  %v2862_v21 = vld [vmem:[%s3542_s0 + $0x70] sm:$0xff]   ;;  %v2868_v22 = vld [vmem:[#allocation2 + $0xa0] sm:$0xff]  }
  0x1a   :  { %v2869_v23 = vld [vmem:[#allocation2 + $0xa8] sm:$0xff]   ;;  %v2855_v24 = vld [vmem:[%s3542_s0 + $0x38] sm:$0xff]   ;;  %v2870_v26 = vld [vmem:[#allocation2 + $0xb0] sm:$0xff]  }
  0x1b   :  { %v2863_v25 = vld [vmem:[%s3542_s0 + $0x78] sm:$0xff]   ;;  %v2872_v28 = vld [vmem:[#allocation2 + $0xc0] sm:$0xff]   ;;  %v2873_v29 = vld [vmem:[#allocation2 + $0xc8] sm:$0xff]  }
  0x1c   :  { %2486 = vmatpush3.bf16.msra.mxu0 %v2846_v2  ;;  %2807 = vmatpush3.bf16.msra.mxu1 %v2846_v2  ;;  %v2871_v27 = vld [vmem:[#allocation2 + $0xb8] sm:$0xff]   ;;  %v2874_v30 = vld [vmem:[#allocation2 + $0xd0] sm:$0xff]   ;;  %v2876_v32 = vld [vmem:[#allocation2 + $0xe0] sm:$0xff]  }
  0x1d   :  { %2487 = vmatprep.subr.bf16.mxu0 %v2847_v4  ;;  %2804 = vmatprep.subr.bf16.mxu1 %v2847_v4  ;;  %v2875_v31 = vld [vmem:[#allocation2 + $0xd8] sm:$0xff]   ;;  %v2877_v33 = vld [vmem:[#allocation2 + $0xe8] sm:$0xff]   ;;  %v3055_v34 = vld [vmem:[%s3545_s3] ss:$0 sm:$0xff] }
  0x20   :  { %2488 = vmatpush3.bf16.msra.mxu0 %v2847_v4  ;;  %2808 = vmatpush3.bf16.msra.mxu1 %v2847_v4 }
  0x21   :  { %2521 = vmatprep.subr.bf16.mxu1 %v2864_v11  ;;  %2569 = vmatprep.subr.bf16.mxu0 %v2872_v28 }
  0x23   :  { %2490 = vmatmul.mubr.msk.bf16.vlgmr.msra.gmra.mrb[0].mxu0 %vm274_vm0, %v2849_v5  ;;  %2506 = vmatmul.mubr.msk.bf16.vlgmr.msra.gmra.mrb[0].mxu1 %vm274_vm0, %v2857_v8 }
  0x24   :  { %2493 = vmatprep.mubr.msk.bf16.mxu0 %vm274_vm0, %v2850_v7  ;;  %2509 = vmatprep.mubr.msk.bf16.mxu1 %vm274_vm0, %v2858_v9 }
  0x25   :  { %2522 = vmatpush3.bf16.msra.mxu1 %v2864_v11  ;;  %2570 = vmatpush3.bf16.msra.mxu0 %v2872_v28 }
  0x26   :  { %2523 = vmatprep.subr.bf16.mxu1 %v2865_v13  ;;  %2571 = vmatprep.subr.bf16.mxu0 %v2873_v29 }
  0x29   :  { %2524 = vmatpush3.bf16.msra.mxu1 %v2865_v13  ;;  %2572 = vmatpush3.bf16.msra.mxu0 %v2873_v29 }
  0x2a   :  { %2525 = vmatprep.subr.bf16.mxu1 %v2866_v16  ;;  %2573 = vmatprep.subr.bf16.mxu0 %v2874_v30 }
  0x2b   :  { %2494 = vmatmul.mubr.msk.bf16.gmra.mrb[4].mxu0 %vm274_vm0, %v2851_v10  ;;  %2510 = vmatmul.mubr.msk.bf16.gmra.mrb[4].mxu1 %vm274_vm0, %v2859_v14 }
  0x2c   :  { %2497 = vmatprep.mubr.msk.bf16.mxu0 %vm274_vm0, %v2852_v12  ;;  %2513 = vmatprep.mubr.msk.bf16.mxu1 %vm274_vm0, %v2860_v15 }
  0x2d   :  { %2526 = vmatpush3.bf16.msra.mxu1 %v2866_v16  ;;  %2574 = vmatpush3.bf16.msra.mxu0 %v2874_v30 }
  0x2e   :  { %2527 = vmatprep.subr.bf16.mxu1 %v2867_v17  ;;  %2575 = vmatprep.subr.bf16.mxu0 %v2875_v31 }
  0x31   :  { %2528 = vmatpush3.bf16.msra.mxu1 %v2867_v17  ;;  %2576 = vmatpush3.bf16.msra.mxu0 %v2875_v31 }
  0x32   :  { %2529 = vmatprep.subr.bf16.mxu1 %v2868_v22  ;;  %2577 = vmatprep.subr.bf16.mxu0 %v2876_v32 }
  0x33   :  { %2498 = vmatmul.mubr.msk.bf16.gmra.mrb[8].mxu0 %vm274_vm0, %v2853_v18  ;;  %2514 = vmatmul.mubr.msk.bf16.gmra.mrb[8].mxu1 %vm274_vm0, %v2861_v19 }
  0x34   :  { %2501 = vmatprep.mubr.msk.bf16.mxu0 %vm274_vm0, %v2854_v20  ;;  %2517 = vmatprep.mubr.msk.bf16.mxu1 %vm274_vm0, %v2862_v21 }
  0x35   :  { %2530 = vmatpush3.bf16.msra.mxu1 %v2868_v22  ;;  %2578 = vmatpush3.bf16.msra.mxu0 %v2876_v32 }
  0x36   :  { %2531 = vmatprep.subr.bf16.mxu1 %v2869_v23  ;;  %2579 = vmatprep.subr.bf16.mxu0 %v2877_v33 }
  0x39   :  { %2532 = vmatpush3.bf16.msra.mxu1 %v2869_v23  ;;  %2580 = vmatpush3.bf16.msra.mxu0 %v2877_v33 }
  0x3a   :  { %2533 = vmatprep.subr.bf16.mxu1 %v2870_v26 }
  0x3b   :  { %2502 = vmatmul.mubr.msk.bf16.gmra.mrb[12].mxu0 %vm274_vm0, %v2855_v24  ;;  %2518 = vmatmul.mubr.msk.bf16.gmra.mrb[12].mxu1 %vm274_vm0, %v2863_v25 }
  0x3d   :  { %2534 = vmatpush3.bf16.msra.mxu1 %v2870_v26 }
  0x3e   :  { %2535 = vmatprep.subr.bf16.mxu1 %v2871_v27 }
  0x41   :  { %2536 = vmatpush3.bf16.msra.mxu1 %v2871_v27 }
  0xf6   :  { %v2491_v35 = vpop.f32.mrb[0].mxu0  ;;  %v2507_v36 = vpop.f32.mrb[0].mxu1 }
  0xf7   :  { %v366_v37 = vadd.f32 %v2491_v35, %v3055_v34  ;;  %v357_v38 = vpop.f32.mrb[1].mxu0  ;;  %v430_v39 = vadd.f32 %v2507_v36, %v3055_v34  ;;  %v421_v40 = vpop.f32.mrb[1].mxu1 }
  0xf8   :  { %v358_v41 = vadd.f32 %v3055_v34, %v357_v38  ;;  %v2492_v42 = vpop.f32.mrb[2].mxu0  ;;  %v422_v43 = vadd.f32 %v3055_v34, %v421_v40  ;;  %v2508_v44 = vpop.f32.mrb[2].mxu1 }
  0xf9   :  { %v369_v45 = vadd.f32 %v2492_v42, %v3055_v34  ;;  %v360_v46 = vpop.f32.mrb[3].mxu0  ;;  %v502_v47 = vmax.f32 %v430_v39, 0.0  ;;  %v433_v48 = vadd.f32 %v2508_v44, %v3055_v34  ;;  %v424_v49 = vpop.f32.mrb[3].mxu1  ;;  %v486_v53 = vmax.f32 %v366_v37, 0.0 }
  0xfa   :  { %v361_v50 = vadd.f32 %v3055_v34, %v360_v46  ;;  %v500_v51 = vmax.f32 %v422_v43, 0.0  ;;  %v425_v52 = vadd.f32 %v3055_v34, %v424_v49  ;;  %v484_v56 = vmax.f32 %v358_v41, 0.0 }
  0xfb   :  { %v487_v54 = vmax.f32 %v369_v45, 0.0  ;;  %v503_v55 = vmax.f32 %v433_v48, 0.0 }
  0xfc   :  { %v485_v57 = vmax.f32 %v361_v50, 0.0  ;;  %v501_v58 = vmax.f32 %v425_v52, 0.0 }
  0xfd   :  { %v517_v59 = vpack.c.bf16 %v487_v54, %v486_v53  ;;  %v3065_v60 = vpack.c.bf16 %v503_v55, %v502_v47 }
  0xfe   :  { %v516_v61 = vpack.c.bf16 %v485_v57, %v484_v56  ;;  %v2495_v62 = vpop.f32.mrb[4].mxu0  ;;  %v3067_v63 = vpack.c.bf16 %v501_v58, %v500_v51  ;;  %v2511_v0 = vpop.f32.mrb[4].mxu1 }
  0xff   :  { %v382_v1 = vadd.f32 %v2495_v62, %v3055_v34  ;;  %v373_v2 = vpop.f32.mrb[5].mxu0  ;;  %v446_v3 = vadd.f32 %v2511_v0, %v3055_v34  ;;  %v437_v4 = vpop.f32.mrb[5].mxu1 }
 0x100   :  { %v374_v5 = vadd.f32 %v3055_v34, %v373_v2  ;;  %v2496_v6 = vpop.f32.mrb[6].mxu0  ;;  %2537 = vmatprep.mubr.bf16.mxu1 %v516_v61  ;;  %v438_v7 = vadd.f32 %v3055_v34, %v437_v4  ;;  %v2512_v8 = vpop.f32.mrb[6].mxu1 }
 0x101   :  { %v385_v9 = vadd.f32 %v2496_v6, %v3055_v34  ;;  %v376_v10 = vpop.f32.mrb[7].mxu0  ;;  %2538 = vmatmul.mubr.bf16.vlgmr.msra.gmra.mrb[16].mxu1 %v517_v59  ;;  %v506_v11 = vmax.f32 %v446_v3, 0.0  ;;  %v449_v12 = vadd.f32 %v2512_v8, %v3055_v34  ;;  %v440_v13 = vpop.f32.mrb[7].mxu1  ;;  %v490_v17 = vmax.f32 %v382_v1, 0.0 }
 0x102   :  { %v377_v14 = vadd.f32 %v3055_v34, %v376_v10  ;;  %v504_v15 = vmax.f32 %v438_v7, 0.0  ;;  %v441_v16 = vadd.f32 %v3055_v34, %v440_v13  ;;  %v488_v20 = vmax.f32 %v374_v5, 0.0 }
 0x103   :  { %v491_v18 = vmax.f32 %v385_v9, 0.0  ;;  %v507_v19 = vmax.f32 %v449_v12, 0.0 }
 0x104   :  { %v489_v21 = vmax.f32 %v377_v14, 0.0  ;;  %v505_v22 = vmax.f32 %v441_v16, 0.0 }
 0x105   :  { %v519_v23 = vpack.c.bf16 %v491_v18, %v490_v17  ;;  %v3077_v24 = vpack.c.bf16 %v507_v19, %v506_v11 }
 0x106   :  { %v518_v25 = vpack.c.bf16 %v489_v21, %v488_v20  ;;  %v2499_v26 = vpop.f32.mrb[8].mxu0  ;;  %v3079_v27 = vpack.c.bf16 %v505_v22, %v504_v15  ;;  %v2515_v28 = vpop.f32.mrb[8].mxu1  ;;  %v2879_v22 = vld [vmem:[#allocation2 + $0xf8] sm:$0xff]  }
 0x107   :  { %v398_v29 = vadd.f32 %v2499_v26, %v3055_v34  ;;  %v389_v30 = vpop.f32.mrb[9].mxu0  ;;  %v462_v31 = vadd.f32 %v2515_v28, %v3055_v34  ;;  %v453_v32 = vpop.f32.mrb[9].mxu1  ;;  %v2885_v26 = vld [vmem:[#allocation2 + $0x68] sm:$0xff]   ;;  %v3104_v28 = vld [vmem:[%s3545_s3 + $0x1] ss:$0 sm:$0xff] }
 0x108   :  { %v390_v33 = vadd.f32 %v3055_v34, %v389_v30  ;;  %v2500_v35 = vpop.f32.mrb[10].mxu0  ;;  %2541 = vmatprep.mubr.bf16.mxu1 %v518_v25  ;;  %v454_v36 = vadd.f32 %v3055_v34, %v453_v32  ;;  %v2516_v37 = vpop.f32.mrb[10].mxu1  ;;  %v2881_v25 = vld [vmem:[#allocation2 + $0x48] sm:$0xff]  }
 0x109   :  { %v401_v38 = vadd.f32 %v2500_v35, %v3055_v34  ;;  %v392_v39 = vpop.f32.mrb[11].mxu0  ;;  %2542 = vmatmul.mubr.bf16.gmra.mrb[20].mxu1 %v519_v23  ;;  %v510_v40 = vmax.f32 %v462_v31, 0.0  ;;  %v465_v41 = vadd.f32 %v2516_v37, %v3055_v34  ;;  %v456_v42 = vpop.f32.mrb[11].mxu1  ;;  %v494_v46 = vmax.f32 %v398_v29, 0.0  ;;  %v2880_v23 = vld [vmem:[#allocation2 + $0x40] sm:$0xff]  }
 0x10a   :  { %v393_v43 = vadd.f32 %v3055_v34, %v392_v39  ;;  %v508_v44 = vmax.f32 %v454_v36, 0.0  ;;  %v457_v45 = vadd.f32 %v3055_v34, %v456_v42  ;;  %v492_v49 = vmax.f32 %v390_v33, 0.0  ;;  %2617 = vmatprep.subr.bf16.mxu1 %v2880_v23 }
 0x10b   :  { %v495_v47 = vmax.f32 %v401_v38, 0.0  ;;  %v511_v48 = vmax.f32 %v465_v41, 0.0  ;;  %2618 = vmatpush3.bf16.msra.mxu1 %v2880_v23 }
 0x10c   :  { %v493_v50 = vmax.f32 %v393_v43, 0.0  ;;  %v509_v51 = vmax.f32 %v457_v45, 0.0  ;;  %2619 = vmatprep.subr.bf16.mxu1 %v2881_v25 }
 0x10d   :  { %v521_v52 = vpack.c.bf16 %v495_v47, %v494_v46  ;;  %v529_v53 = vpack.c.bf16 %v511_v48, %v510_v40 }
 0x10e   :  { %v520_v54 = vpack.c.bf16 %v493_v50, %v492_v49  ;;  %v2503_v55 = vpop.f32.mrb[12].mxu0  ;;  %v528_v56 = vpack.c.bf16 %v509_v51, %v508_v44  ;;  %v2519_v57 = vpop.f32.mrb[12].mxu1 }
 0x10f   :  { %v414_v58 = vadd.f32 %v2503_v55, %v3055_v34  ;;  %v405_v59 = vpop.f32.mrb[13].mxu0  ;;  %v478_v61 = vadd.f32 %v2519_v57, %v3055_v34  ;;  %v469_v62 = vpop.f32.mrb[13].mxu1  ;;  %2620 = vmatpush3.bf16.msra.mxu1 %v2881_v25 }
 0x110   :  { %v406_v0 = vadd.f32 %v3055_v34, %v405_v59  ;;  %v2504_v1 = vpop.f32.mrb[14].mxu0  ;;  %2545 = vmatprep.mubr.bf16.mxu1 %v520_v54  ;;  %v470_v2 = vadd.f32 %v3055_v34, %v469_v62  ;;  %v2520_v3 = vpop.f32.mrb[14].mxu1 }
 0x111   :  { %v417_v4 = vadd.f32 %v2504_v1, %v3055_v34  ;;  %v408_v5 = vpop.f32.mrb[15].mxu0  ;;  %2546 = vmatmul.mubr.bf16.gmra.mrb[24].mxu1 %v521_v52  ;;  %v514_v6 = vmax.f32 %v478_v61, 0.0  ;;  %v481_v7 = vadd.f32 %v2520_v3, %v3055_v34  ;;  %v472_v8 = vpop.f32.mrb[15].mxu1  ;;  %v498_v12 = vmax.f32 %v414_v58, 0.0 }
 0x112   :  { %v409_v9 = vadd.f32 %v3055_v34, %v408_v5  ;;  %v512_v10 = vmax.f32 %v470_v2, 0.0  ;;  %v473_v11 = vadd.f32 %v3055_v34, %v472_v8  ;;  %v496_v15 = vmax.f32 %v406_v0, 0.0  ;;  %v2878_v34 = vld [vmem:[#allocation2 + $0xf0] sm:$0xff]  }
 0x113   :  { %v499_v13 = vmax.f32 %v417_v4, 0.0  ;;  %v515_v14 = vmax.f32 %v481_v7, 0.0  ;;  %2581 = vmatprep.subr.bf16.mxu0 %v2878_v34 }
 0x114   :  { %v497_v16 = vmax.f32 %v409_v9, 0.0  ;;  %v513_v17 = vmax.f32 %v473_v11, 0.0  ;;  %2582 = vmatpush3.bf16.msra.mxu0 %v2878_v34 }
 0x115   :  { %v523_v18 = vpack.c.bf16 %v499_v13, %v498_v12  ;;  %v531_v19 = vpack.c.bf16 %v515_v14, %v514_v6  ;;  %2583 = vmatprep.subr.bf16.mxu0 %v2879_v22 }
 0x116   :  { %v522_v20 = vpack.c.bf16 %v497_v16, %v496_v15  ;;  %v530_v21 = vpack.c.bf16 %v513_v17, %v512_v10 }
 0x118   :  { %2549 = vmatprep.mubr.bf16.mxu1 %v522_v20  ;;  %2584 = vmatpush3.bf16.msra.mxu0 %v2879_v22 }
 0x119   :  { %2550 = vmatmul.mubr.bf16.gmra.mrb[28].mxu1 %v523_v18 }
 0x11a   :  { %2553 = vmatprep.mubr.bf16.mxu1 %v3067_v63  ;;  %v2883_v63 = vld [vmem:[#allocation2 + $0x58] sm:$0xff]  }
 0x121   :  { %2554 = vmatmul.mubr.bf16.gmra.mrb[32].mxu1 %v3065_v60  ;;  %v2882_v60 = vld [vmem:[#allocation2 + $0x50] sm:$0xff]  }
 0x122   :  { %2557 = vmatprep.mubr.bf16.mxu1 %v3079_v27  ;;  %2621 = vmatprep.subr.bf16.mxu1 %v2882_v60  ;;  %v2886_v27 = vld [vmem:[#allocation2 + $0x70] sm:$0xff]  }
 0x123   :  { %2622 = vmatpush3.bf16.msra.mxu1 %v2882_v60 }
 0x124   :  { %2623 = vmatprep.subr.bf16.mxu1 %v2883_v63 }
 0x127   :  { %2624 = vmatpush3.bf16.msra.mxu1 %v2883_v63 }
 0x129   :  { %2558 = vmatmul.mubr.bf16.gmra.mrb[36].mxu1 %v3077_v24  ;;  %v2884_v24 = vld [vmem:[#allocation2 + $0x60] sm:$0xff]  }
 0x12a   :  { %2561 = vmatprep.mubr.bf16.mxu1 %v528_v56  ;;  %2625 = vmatprep.subr.bf16.mxu1 %v2884_v24 }
 0x12b   :  { %2626 = vmatpush3.bf16.msra.mxu1 %v2884_v24 }
 0x12c   :  { %2627 = vmatprep.subr.bf16.mxu1 %v2885_v26 }
 0x12f   :  { %2628 = vmatpush3.bf16.msra.mxu1 %v2885_v26 }
 0x130   :  { %2629 = vmatprep.subr.bf16.mxu1 %v2886_v27 }
 0x131   :  { %2562 = vmatmul.mubr.bf16.gmra.mrb[40].mxu1 %v529_v53 }
 0x132   :  { %2565 = vmatprep.mubr.bf16.mxu1 %v530_v21 }
 0x133   :  { %2630 = vmatpush3.bf16.msra.mxu1 %v2886_v27 }
 0x139   :  { %2566 = vmatmul.mubr.bf16.gmra.mrb[44].mxu1 %v531_v19 }
 0x1d4   :  { %v2539_v29 = vpop.f32.mrb[16].mxu1 }
 0x1d5   :  { %v627_v30 = vadd.f32 %v2539_v29, %v3104_v28  ;;  %v618_v31 = vpop.f32.mrb[17].mxu1 }
 0x1d6   :  { %v619_v32 = vadd.f32 %v3104_v28, %v618_v31  ;;  %v2540_v33 = vpop.f32.mrb[18].mxu1 }
 0x1d7   :  { %v630_v35 = vadd.f32 %v2540_v33, %v3104_v28  ;;  %v621_v36 = vpop.f32.mrb[19].mxu1  ;;  %v747_v38 = vmax.f32 %v627_v30, 0.0 }
 0x1d8   :  { %v622_v37 = vadd.f32 %v3104_v28, %v621_v36  ;;  %v745_v40 = vmax.f32 %v619_v32, 0.0 }
 0x1d9   :  { %v748_v39 = vmax.f32 %v630_v35, 0.0 }
 0x1da   :  { %v746_v41 = vmax.f32 %v622_v37, 0.0 }
 0x1db   :  { %v778_v42 = vpack.c.bf16 %v748_v39, %v747_v38 }
 0x1dc   :  { %v777_v43 = vpack.c.bf16 %v746_v41, %v745_v40  ;;  %v2543_v44 = vpop.f32.mrb[20].mxu1 }
 0x1dd   :  { %v643_v45 = vadd.f32 %v2543_v44, %v3104_v28  ;;  %v634_v46 = vpop.f32.mrb[21].mxu1 }
 0x1de   :  { %v635_v47 = vadd.f32 %v3104_v28, %v634_v46  ;;  %v2544_v48 = vpop.f32.mrb[22].mxu1  ;;  %2585 = vmatprep.mubr.bf16.mxu0 %v777_v43 }
 0x1df   :  { %v646_v49 = vadd.f32 %v2544_v48, %v3104_v28  ;;  %v637_v50 = vpop.f32.mrb[23].mxu1  ;;  %2586 = vmatmul.mubr.bf16.vlgmr.msra.gmra.mrb[16].mxu0 %v778_v42  ;;  %v751_v52 = vmax.f32 %v643_v45, 0.0 }
 0x1e0   :  { %v638_v51 = vadd.f32 %v3104_v28, %v637_v50  ;;  %v749_v54 = vmax.f32 %v635_v47, 0.0 }
 0x1e1   :  { %v752_v53 = vmax.f32 %v646_v49, 0.0 }
 0x1e2   :  { %v750_v55 = vmax.f32 %v638_v51, 0.0 }
 0x1e3   :  { %v780_v56 = vpack.c.bf16 %v752_v53, %v751_v52 }
 0x1e4   :  { %v779_v57 = vpack.c.bf16 %v750_v55, %v749_v54  ;;  %v2547_v58 = vpop.f32.mrb[24].mxu1 }
 0x1e5   :  { %v659_v59 = vadd.f32 %v2547_v58, %v3104_v28  ;;  %v650_v61 = vpop.f32.mrb[25].mxu1 }
 0x1e6   :  { %v651_v62 = vadd.f32 %v3104_v28, %v650_v61  ;;  %v2548_v0 = vpop.f32.mrb[26].mxu1  ;;  %2589 = vmatprep.mubr.bf16.mxu0 %v779_v57 }
 0x1e7   :  { %v662_v1 = vadd.f32 %v2548_v0, %v3104_v28  ;;  %v653_v2 = vpop.f32.mrb[27].mxu1  ;;  %2590 = vmatmul.mubr.bf16.gmra.mrb[20].mxu0 %v780_v56  ;;  %v755_v4 = vmax.f32 %v659_v59, 0.0 }
 0x1e8   :  { %v654_v3 = vadd.f32 %v3104_v28, %v653_v2  ;;  %v753_v6 = vmax.f32 %v651_v62, 0.0 }
 0x1e9   :  { %v756_v5 = vmax.f32 %v662_v1, 0.0 }
 0x1ea   :  { %v754_v7 = vmax.f32 %v654_v3, 0.0 }
 0x1eb   :  { %v782_v8 = vpack.c.bf16 %v756_v5, %v755_v4 }
 0x1ec   :  { %v781_v9 = vpack.c.bf16 %v754_v7, %v753_v6  ;;  %v2551_v10 = vpop.f32.mrb[28].mxu1 }
 0x1ed   :  { %v675_v11 = vadd.f32 %v2551_v10, %v3104_v28  ;;  %v666_v12 = vpop.f32.mrb[29].mxu1 }
 0x1ee   :  { %v667_v13 = vadd.f32 %v3104_v28, %v666_v12  ;;  %v2552_v14 = vpop.f32.mrb[30].mxu1  ;;  %2593 = vmatprep.mubr.bf16.mxu0 %v781_v9 }
 0x1ef   :  { %v678_v15 = vadd.f32 %v2552_v14, %v3104_v28  ;;  %v669_v16 = vpop.f32.mrb[31].mxu1  ;;  %2594 = vmatmul.mubr.bf16.gmra.mrb[24].mxu0 %v782_v8  ;;  %v759_v18 = vmax.f32 %v675_v11, 0.0 }
 0x1f0   :  { %v670_v17 = vadd.f32 %v3104_v28, %v669_v16  ;;  %v757_v20 = vmax.f32 %v667_v13, 0.0 }
 0x1f1   :  { %v760_v19 = vmax.f32 %v678_v15, 0.0 }
 0x1f2   :  { %v758_v21 = vmax.f32 %v670_v17, 0.0  ;;  %v2887_v17 = vld [vmem:[#allocation2 + $0x78] sm:$0xff]  }
 0x1f3   :  { %v784_v34 = vpack.c.bf16 %v760_v19, %v759_v18  ;;  %2631 = vmatprep.subr.bf16.mxu1 %v2887_v17  ;;  %v2888_v18 = vld [vmem:[#allocation2 + $0x20] sm:$0xff]  }
 0x1f4   :  { %v783_v22 = vpack.c.bf16 %v758_v21, %v757_v20  ;;  %v2555_v23 = vpop.f32.mrb[32].mxu1  ;;  %2632 = vmatpush3.bf16.msra.mxu1 %v2887_v17  ;;  %v3141_v19 = vld [vmem:[%s3545_s3 + $0x2] ss:$0 sm:$0xff] }
 0x1f5   :  { %v691_v25 = vadd.f32 %v2555_v23, %v3104_v28  ;;  %v682_v60 = vpop.f32.mrb[33].mxu1  ;;  %2665 = vmatprep.subr.bf16.mxu1 %v2888_v18 }
 0x1f6   :  { %v683_v63 = vadd.f32 %v3104_v28, %v682_v60  ;;  %v2556_v24 = vpop.f32.mrb[34].mxu1  ;;  %2597 = vmatprep.mubr.bf16.mxu0 %v783_v22  ;;  %v2909_v22 = vld [vmem:[#allocation2 + $0x108] sm:$0xff]  }
 0x1f7   :  { %v694_v26 = vadd.f32 %v2556_v24, %v3104_v28  ;;  %v685_v27 = vpop.f32.mrb[35].mxu1  ;;  %2598 = vmatmul.mubr.bf16.gmra.mrb[28].mxu0 %v784_v34  ;;  %v763_v30 = vmax.f32 %v691_v25, 0.0  ;;  %v2908_v34 = vld [vmem:[#allocation2 + $0x100] sm:$0xff]  }
 0x1f8   :  { %v686_v29 = vadd.f32 %v3104_v28, %v685_v27  ;;  %v761_v32 = vmax.f32 %v683_v63, 0.0  ;;  %2705 = vmatprep.subr.bf16.mxu0 %v2908_v34  ;;  %v2910_v27 = vld [vmem:[#allocation2 + $0x110] sm:$0xff]  }
 0x1f9   :  { %v764_v31 = vmax.f32 %v694_v26, 0.0  ;;  %2706 = vmatpush3.bf16.msra.mxu0 %v2908_v34 }
 0x1fa   :  { %v762_v33 = vmax.f32 %v686_v29, 0.0  ;;  %2707 = vmatprep.subr.bf16.mxu0 %v2909_v22 }
 0x1fb   :  { %v786_v35 = vpack.c.bf16 %v764_v31, %v763_v30  ;;  %v2889_v30 = vld [vmem:[#allocation2 + $0x28] sm:$0xff]  }
 0x1fc   :  { %v785_v36 = vpack.c.bf16 %v762_v33, %v761_v32  ;;  %v2559_v37 = vpop.f32.mrb[36].mxu1 }
 0x1fd   :  { %v707_v38 = vadd.f32 %v2559_v37, %v3104_v28  ;;  %v698_v39 = vpop.f32.mrb[37].mxu1  ;;  %2708 = vmatpush3.bf16.msra.mxu0 %v2909_v22 }
 0x1fe   :  { %v699_v40 = vadd.f32 %v3104_v28, %v698_v39  ;;  %v2560_v41 = vpop.f32.mrb[38].mxu1  ;;  %2601 = vmatprep.mubr.bf16.mxu0 %v785_v36  ;;  %2709 = vmatprep.subr.bf16.mxu0 %v2910_v27 }
 0x1ff   :  { %v710_v42 = vadd.f32 %v2560_v41, %v3104_v28  ;;  %v701_v43 = vpop.f32.mrb[39].mxu1  ;;  %2602 = vmatmul.mubr.bf16.gmra.mrb[32].mxu0 %v786_v35  ;;  %v767_v45 = vmax.f32 %v707_v38, 0.0  ;;  %v2911_v35 = vld [vmem:[#allocation2 + $0x118] sm:$0xff]  }
 0x200   :  { %v702_v44 = vadd.f32 %v3104_v28, %v701_v43  ;;  %v765_v47 = vmax.f32 %v699_v40, 0.0  ;;  %v2890_v40 = vld [vmem:[#allocation2 + $0x30] sm:$0xff]   ;;  %v2912_v43 = vld [vmem:[#allocation2 + $0x120] sm:$0xff]  }
 0x201   :  { %v768_v46 = vmax.f32 %v710_v42, 0.0  ;;  %2710 = vmatpush3.bf16.msra.mxu0 %v2910_v27 }
 0x202   :  { %v766_v48 = vmax.f32 %v702_v44, 0.0  ;;  %2711 = vmatprep.subr.bf16.mxu0 %v2911_v35 }
 0x203   :  { %v788_v49 = vpack.c.bf16 %v768_v46, %v767_v45  ;;  %v2891_v45 = vld [vmem:[#allocation2 + $0x38] sm:$0xff]  }
 0x204   :  { %v787_v50 = vpack.c.bf16 %v766_v48, %v765_v47  ;;  %v2563_v51 = vpop.f32.mrb[40].mxu1 }
 0x205   :  { %v723_v52 = vadd.f32 %v2563_v51, %v3104_v28  ;;  %v714_v53 = vpop.f32.mrb[41].mxu1  ;;  %2712 = vmatpush3.bf16.msra.mxu0 %v2911_v35 }
 0x206   :  { %v715_v54 = vadd.f32 %v3104_v28, %v714_v53  ;;  %v2564_v55 = vpop.f32.mrb[42].mxu1  ;;  %2605 = vmatprep.mubr.bf16.mxu0 %v787_v50  ;;  %2713 = vmatprep.subr.bf16.mxu0 %v2912_v43 }
 0x207   :  { %v726_v56 = vadd.f32 %v2564_v55, %v3104_v28  ;;  %v717_v57 = vpop.f32.mrb[43].mxu1  ;;  %2606 = vmatmul.mubr.bf16.gmra.mrb[36].mxu0 %v788_v49  ;;  %v771_v59 = vmax.f32 %v723_v52, 0.0  ;;  %v2913_v49 = vld [vmem:[#allocation2 + $0x128] sm:$0xff]  }
 0x208   :  { %v718_v58 = vadd.f32 %v3104_v28, %v717_v57  ;;  %v769_v62 = vmax.f32 %v715_v54, 0.0 }
 0x209   :  { %v772_v61 = vmax.f32 %v726_v56, 0.0  ;;  %2714 = vmatpush3.bf16.msra.mxu0 %v2912_v43  ;;  %v2914_v56 = vld [vmem:[#allocation2 + $0x130] sm:$0xff]  }
 0x20a   :  { %v770_v0 = vmax.f32 %v718_v58, 0.0  ;;  %2715 = vmatprep.subr.bf16.mxu0 %v2913_v49 }
 0x20b   :  { %v790_v1 = vpack.c.bf16 %v772_v61, %v771_v59 }
 0x20c   :  { %v789_v2 = vpack.c.bf16 %v770_v0, %v769_v62  ;;  %v2567_v3 = vpop.f32.mrb[44].mxu1 }
 0x20d   :  { %v739_v4 = vadd.f32 %v2567_v3, %v3104_v28  ;;  %v730_v5 = vpop.f32.mrb[45].mxu1  ;;  %2716 = vmatpush3.bf16.msra.mxu0 %v2913_v49  ;;  %v2897_v49 = vld [vmem:[%s3543_s1 + $0x28] sm:$0xff]  }
 0x20e   :  { %v731_v6 = vadd.f32 %v3104_v28, %v730_v5  ;;  %v2568_v7 = vpop.f32.mrb[46].mxu1  ;;  %2609 = vmatprep.mubr.bf16.mxu0 %v789_v2  ;;  %2717 = vmatprep.subr.bf16.mxu0 %v2914_v56 }
 0x20f   :  { %v742_v8 = vadd.f32 %v2568_v7, %v3104_v28  ;;  %v733_v9 = vpop.f32.mrb[47].mxu1  ;;  %2610 = vmatmul.mubr.bf16.gmra.mrb[40].mxu0 %v790_v1  ;;  %v775_v11 = vmax.f32 %v739_v4, 0.0 }
 0x210   :  { %v734_v10 = vadd.f32 %v3104_v28, %v733_v9  ;;  %v773_v13 = vmax.f32 %v731_v6, 0.0 }
 0x211   :  { %v776_v12 = vmax.f32 %v742_v8, 0.0  ;;  %2718 = vmatpush3.bf16.msra.mxu0 %v2914_v56  ;;  %v2904_v56 = vld [vmem:[%s3543_s1 + $0x60] sm:$0xff]  }
 0x212   :  { %v774_v14 = vmax.f32 %v734_v10, 0.0 }
 0x213   :  { %v792_v15 = vpack.c.bf16 %v776_v12, %v775_v11 }
 0x214   :  { %v791_v16 = vpack.c.bf16 %v774_v14, %v773_v13 }
 0x216   :  { %2613 = vmatprep.mubr.bf16.mxu0 %v791_v16 }
 0x217   :  { %2614 = vmatmul.mubr.bf16.gmra.mrb[44].mxu0 %v792_v15 }
 0x2b2   :  { %v2587_v20 = vpop.f32.mrb[16].mxu0 }
 0x2b3   :  { %v888_v28 = vadd.f32 %v2587_v20, %v3141_v19  ;;  %v879_v21 = vpop.f32.mrb[17].mxu0 }
 0x2b4   :  { %v880_v23 = vadd.f32 %v3141_v19, %v879_v21  ;;  %v2588_v25 = vpop.f32.mrb[18].mxu0 }
 0x2b5   :  { %2136 = vst [vmem:[%s3546_s4 + $0x20] sm:$0xff] %v888_v28  ;;  %v891_v60 = vadd.f32 %v2588_v25, %v3141_v19  ;;  %v882_v63 = vpop.f32.mrb[19].mxu0 }
 0x2b6   :  { %2134 = vst [vmem:[%s3546_s4] sm:$0xff] %v880_v23  ;;  %v883_v24 = vadd.f32 %v3141_v19, %v882_v63 }
 0x2b7   :  { %v1039_v26 = vpack.c.bf16 %v891_v60, %v888_v28  ;;  %2137 = vst [vmem:[%s3546_s4 + $0x30] sm:$0xff] %v891_v60 }
 0x2b8   :  { %v1038_v29 = vpack.c.bf16 %v883_v24, %v880_v23  ;;  %2135 = vst [vmem:[%s3546_s4 + $0x10] sm:$0xff] %v883_v24 }
 0x2ba   :  { %v2591_v31 = vpop.f32.mrb[20].mxu0  ;;  %2633 = vmatprep.mubr.bf16.mxu1 %v1038_v29 }
 0x2bb   :  { %v904_v32 = vadd.f32 %v2591_v31, %v3141_v19  ;;  %v895_v33 = vpop.f32.mrb[21].mxu0  ;;  %2634 = vmatmul.mubr.bf16.vlgmr.msra.gmra.mrb[48].mxu1 %v1039_v26 }
 0x2bc   :  { %v896_v36 = vadd.f32 %v3141_v19, %v895_v33  ;;  %2666 = vmatpush3.bf16.msra.mxu1 %v2888_v18  ;;  %v2592_v37 = vpop.f32.mrb[22].mxu0 }
 0x2bd   :  { %2140 = vst [vmem:[%s3546_s4 + $0x60] sm:$0xff] %v904_v32  ;;  %v907_v38 = vadd.f32 %v2592_v37, %v3141_v19  ;;  %v898_v39 = vpop.f32.mrb[23].mxu0  ;;  %2667 = vmatprep.subr.bf16.mxu1 %v2889_v30 }
 0x2be   :  { %2138 = vst [vmem:[%s3546_s4 + $0x40] sm:$0xff] %v896_v36  ;;  %v899_v41 = vadd.f32 %v3141_v19, %v898_v39 }
 0x2bf   :  { %v1041_v42 = vpack.c.bf16 %v907_v38, %v904_v32  ;;  %2141 = vst [vmem:[%s3546_s4 + $0x70] sm:$0xff] %v907_v38 }
 0x2c0   :  { %v1040_v44 = vpack.c.bf16 %v899_v41, %v896_v36  ;;  %2139 = vst [vmem:[%s3546_s4 + $0x50] sm:$0xff] %v899_v41  ;;  %2668 = vmatpush3.bf16.msra.mxu1 %v2889_v30 }
 0x2c1   :  { %2669 = vmatprep.subr.bf16.mxu1 %v2890_v40 }
 0x2c2   :  { %v2595_v46 = vpop.f32.mrb[24].mxu0  ;;  %2637 = vmatprep.mubr.bf16.mxu1 %v1040_v44 }
 0x2c3   :  { %v920_v47 = vadd.f32 %v2595_v46, %v3141_v19  ;;  %v911_v48 = vpop.f32.mrb[25].mxu0  ;;  %2638 = vmatmul.mubr.bf16.gmra.mrb[52].mxu1 %v1041_v42  ;;  %v2894_v46 = vld [vmem:[%s3543_s1 + $0x10] sm:$0xff]  }
 0x2c4   :  { %v912_v50 = vadd.f32 %v3141_v19, %v911_v48  ;;  %v2596_v51 = vpop.f32.mrb[26].mxu0  ;;  %2670 = vmatpush3.bf16.msra.mxu1 %v2890_v40  ;;  %v2896_v48 = vld [vmem:[%s3543_s1 + $0x20] sm:$0xff]  }
 0x2c5   :  { %2144 = vst [vmem:[%s3546_s4 + $0xa0] sm:$0xff] %v920_v47  ;;  %v923_v52 = vadd.f32 %v2596_v51, %v3141_v19  ;;  %v914_v53 = vpop.f32.mrb[27].mxu0  ;;  %2671 = vmatprep.subr.bf16.mxu1 %v2891_v45  ;;  %v2899_v51 = vld [vmem:[%s3543_s1 + $0x38] sm:$0xff]  }
 0x2c6   :  { %2142 = vst [vmem:[%s3546_s4 + $0x80] sm:$0xff] %v912_v50  ;;  %v915_v54 = vadd.f32 %v3141_v19, %v914_v53  ;;  %v2901_v53 = vld [vmem:[%s3543_s1 + $0x48] sm:$0xff]  }
 0x2c7   :  { %v1043_v55 = vpack.c.bf16 %v923_v52, %v920_v47  ;;  %2145 = vst [vmem:[%s3546_s4 + $0xb0] sm:$0xff] %v923_v52  ;;  %v2895_v47 = vld [vmem:[%s3543_s1 + $0x18] sm:$0xff]   ;;  %v2900_v52 = vld [vmem:[%s3543_s1 + $0x40] sm:$0xff]  }
 0x2c8   :  { %v1042_v57 = vpack.c.bf16 %v915_v54, %v912_v50  ;;  %2143 = vst [vmem:[%s3546_s4 + $0x90] sm:$0xff] %v915_v54  ;;  %2672 = vmatpush3.bf16.msra.mxu1 %v2891_v45  ;;  %v2892_v45 = vld [vmem:[%s3543_s1] sm:$0xff]   ;;  %v2898_v50 = vld [vmem:[%s3543_s1 + $0x30] sm:$0xff]  }
 0x2c9   :  { %v2902_v54 = vld [vmem:[%s3543_s1 + $0x50] sm:$0xff]  }
 0x2ca   :  { %v2599_v58 = vpop.f32.mrb[28].mxu0  ;;  %2641 = vmatprep.mubr.bf16.mxu1 %v1042_v57  ;;  %v2905_v57 = vld [vmem:[%s3543_s1 + $0x68] sm:$0xff]  }
 0x2cb   :  { %v936_v59 = vadd.f32 %v2599_v58, %v3141_v19  ;;  %v927_v61 = vpop.f32.mrb[29].mxu0  ;;  %2642 = vmatmul.mubr.bf16.gmra.mrb[56].mxu1 %v1043_v55  ;;  %v2903_v55 = vld [vmem:[%s3543_s1 + $0x58] sm:$0xff]   ;;  %v2906_v58 = vld [vmem:[%s3543_s1 + $0x70] sm:$0xff]  }
 0x2cc   :  { %v928_v62 = vadd.f32 %v3141_v19, %v927_v61  ;;  %v2600_v0 = vpop.f32.mrb[30].mxu0  ;;  %v2915_v61 = vld [vmem:[#allocation2 + $0x138] sm:$0xff]  }
 0x2cd   :  { %2148 = vst [vmem:[%s3546_s4 + $0xe0] sm:$0xff] %v936_v59  ;;  %v939_v1 = vadd.f32 %v2600_v0, %v3141_v19  ;;  %v930_v2 = vpop.f32.mrb[31].mxu0  ;;  %2719 = vmatprep.subr.bf16.mxu0 %v2915_v61  ;;  %v3338_v0 = vld [vmem:[%s3545_s3 + $0x3] ss:$0 sm:$0xff] }
 0x2ce   :  { %2146 = vst [vmem:[%s3546_s4 + $0xc0] sm:$0xff] %v928_v62  ;;  %v931_v3 = vadd.f32 %v3141_v19, %v930_v2  ;;  %2720 = vmatpush3.bf16.msra.mxu0 %v2915_v61 }
 0x2cf   :  { %v1045_v4 = vpack.c.bf16 %v939_v1, %v936_v59  ;;  %2149 = vst [vmem:[%s3546_s4 + $0xf0] sm:$0xff] %v939_v1  ;;  %v2907_v59 = vld [vmem:[%s3543_s1 + $0x78] sm:$0xff]  }
 0x2d0   :  { %v1044_v5 = vpack.c.bf16 %v931_v3, %v928_v62  ;;  %2147 = vst [vmem:[%s3546_s4 + $0xd0] sm:$0xff] %v931_v3  ;;  %v2916_v62 = vld [vmem:[#allocation2 + $0x140] sm:$0xff]  }
 0x2d1   :  { %2753 = vmatprep.subr.bf16.mxu0 %v2916_v62 }
 0x2d2   :  { %v2603_v6 = vpop.f32.mrb[32].mxu0  ;;  %2645 = vmatprep.mubr.bf16.mxu1 %v1044_v5 }
 0x2d3   :  { %v952_v7 = vadd.f32 %v2603_v6, %v3141_v19  ;;  %v943_v8 = vpop.f32.mrb[33].mxu0  ;;  %2646 = vmatmul.mubr.bf16.gmra.mrb[60].mxu1 %v1045_v4 }
 0x2d4   :  { %v944_v9 = vadd.f32 %v3141_v19, %v943_v8  ;;  %v2604_v10 = vpop.f32.mrb[34].mxu0 }
 0x2d5   :  { %2152 = vst [vmem:[%s3546_s4 + $0x120] sm:$0xff] %v952_v7  ;;  %v955_v11 = vadd.f32 %v2604_v10, %v3141_v19  ;;  %v946_v12 = vpop.f32.mrb[35].mxu0 }
 0x2d6   :  { %2150 = vst [vmem:[%s3546_s4 + $0x100] sm:$0xff] %v944_v9  ;;  %v947_v13 = vadd.f32 %v3141_v19, %v946_v12 }
 0x2d7   :  { %v1047_v14 = vpack.c.bf16 %v955_v11, %v952_v7  ;;  %2153 = vst [vmem:[%s3546_s4 + $0x130] sm:$0xff] %v955_v11 }
 0x2d8   :  { %v1046_v15 = vpack.c.bf16 %v947_v13, %v944_v9  ;;  %2151 = vst [vmem:[%s3546_s4 + $0x110] sm:$0xff] %v947_v13 }
 0x2da   :  { %v2607_v16 = vpop.f32.mrb[36].mxu0  ;;  %2649 = vmatprep.mubr.bf16.mxu1 %v1046_v15 }
 0x2db   :  { %v968_v17 = vadd.f32 %v2607_v16, %v3141_v19  ;;  %v959_v18 = vpop.f32.mrb[37].mxu0  ;;  %2650 = vmatmul.mubr.bf16.gmra.mrb[64].mxu1 %v1047_v14 }
 0x2dc   :  { %v960_v20 = vadd.f32 %v3141_v19, %v959_v18  ;;  %v2608_v28 = vpop.f32.mrb[38].mxu0  ;;  %v2917_v18 = vld [vmem:[#allocation2 + $0x148] sm:$0xff]  }
 0x2dd   :  { %2156 = vst [vmem:[%s3546_s4 + $0x160] sm:$0xff] %v968_v17  ;;  %v971_v21 = vadd.f32 %v2608_v28, %v3141_v19  ;;  %v962_v34 = vpop.f32.mrb[39].mxu0 }
 0x2de   :  { %2154 = vst [vmem:[%s3546_s4 + $0x140] sm:$0xff] %v960_v20  ;;  %v963_v22 = vadd.f32 %v3141_v19, %v962_v34 }
 0x2df   :  { %v1049_v23 = vpack.c.bf16 %v971_v21, %v968_v17  ;;  %2157 = vst [vmem:[%s3546_s4 + $0x170] sm:$0xff] %v971_v21 }
 0x2e0   :  { %v1048_v25 = vpack.c.bf16 %v963_v22, %v960_v20  ;;  %2155 = vst [vmem:[%s3546_s4 + $0x150] sm:$0xff] %v963_v22 }
 0x2e2   :  { %v2611_v60 = vpop.f32.mrb[40].mxu0  ;;  %2653 = vmatprep.mubr.bf16.mxu1 %v1048_v25 }
 0x2e3   :  { %v984_v63 = vadd.f32 %v2611_v60, %v3141_v19  ;;  %v975_v24 = vpop.f32.mrb[41].mxu0  ;;  %2654 = vmatmul.mubr.bf16.gmra.mrb[68].mxu1 %v1049_v23  ;;  %v2918_v60 = vld [vmem:[#allocation2 + $0x150] sm:$0xff]  }
 0x2e4   :  { %v976_v26 = vadd.f32 %v3141_v19, %v975_v24  ;;  %v2612_v27 = vpop.f32.mrb[42].mxu0 }
 0x2e5   :  { %2160 = vst [vmem:[%s3546_s4 + $0x1a0] sm:$0xff] %v984_v63  ;;  %v987_v29 = vadd.f32 %v2612_v27, %v3141_v19  ;;  %v978_v30 = vpop.f32.mrb[43].mxu0 }
 0x2e6   :  { %2158 = vst [vmem:[%s3546_s4 + $0x180] sm:$0xff] %v976_v26  ;;  %v979_v31 = vadd.f32 %v3141_v19, %v978_v30 }
 0x2e7   :  { %v1051_v32 = vpack.c.bf16 %v987_v29, %v984_v63  ;;  %2161 = vst [vmem:[%s3546_s4 + $0x1b0] sm:$0xff] %v987_v29 }
 0x2e8   :  { %v1050_v33 = vpack.c.bf16 %v979_v31, %v976_v26  ;;  %2159 = vst [vmem:[%s3546_s4 + $0x190] sm:$0xff] %v979_v31 }
 0x2ea   :  { %v2615_v35 = vpop.f32.mrb[44].mxu0  ;;  %2657 = vmatprep.mubr.bf16.mxu1 %v1050_v33 }
 0x2eb   :  { %v1000_v36 = vadd.f32 %v2615_v35, %v3141_v19  ;;  %v991_v37 = vpop.f32.mrb[45].mxu0  ;;  %2658 = vmatmul.mubr.bf16.gmra.mrb[72].mxu1 %v1051_v32  ;;  %v2919_v32 = vld [vmem:[#allocation2 + $0x158] sm:$0xff]  }
 0x2ec   :  { %v992_v38 = vadd.f32 %v3141_v19, %v991_v37  ;;  %v2616_v39 = vpop.f32.mrb[46].mxu0 }
 0x2ed   :  { %2164 = vst [vmem:[%s3546_s4 + $0x1e0] sm:$0xff] %v1000_v36  ;;  %v1003_v40 = vadd.f32 %v2616_v39, %v3141_v19  ;;  %v994_v41 = vpop.f32.mrb[47].mxu0 }
 0x2ee   :  { %2162 = vst [vmem:[%s3546_s4 + $0x1c0] sm:$0xff] %v992_v38  ;;  %v995_v42 = vadd.f32 %v3141_v19, %v994_v41  ;;  %v2893_v19 = vld [vmem:[%s3543_s1 + $0x8] sm:$0xff]   ;;  %v2920_v41 = vld [vmem:[#allocation2 + $0x160] sm:$0xff]  }
 0x2ef   :  { %v1053_v43 = vpack.c.bf16 %v1003_v40, %v1000_v36  ;;  %2165 = vst [vmem:[%s3546_s4 + $0x1f0] sm:$0xff] %v1003_v40 }
 0x2f0   :  { %v1052_v44 = vpack.c.bf16 %v995_v42, %v992_v38  ;;  %2163 = vst [vmem:[%s3546_s4 + $0x1d0] sm:$0xff] %v995_v42 }
 0x2f2   :  { %2661 = vmatprep.mubr.bf16.mxu1 %v1052_v44 }
 0x2f3   :  { %2662 = vmatmul.mubr.bf16.gmra.mrb[76].mxu1 %v1053_v43 }
 0x2f4   :  { %2673 = vmatprep.mubr.msk.bf16.mxu1 %vm274_vm0, %v2892_v45 }
 0x2fb   :  { %2674 = vmatmul.mubr.msk.bf16.vlgmr.msra.gmra.mrb[48].mxu1 %vm274_vm0, %v2893_v19 }
 0x2fc   :  { %2677 = vmatprep.mubr.msk.bf16.mxu1 %vm274_vm0, %v2894_v46 }
 0x303   :  { %2678 = vmatmul.mubr.msk.bf16.gmra.mrb[52].mxu1 %vm274_vm0, %v2895_v47 }
 0x304   :  { %2681 = vmatprep.mubr.msk.bf16.mxu1 %vm274_vm0, %v2896_v48  ;;  %v2921_v48 = vld [vmem:[#allocation2 + $0x168] sm:$0xff]  }
 0x30b   :  { %2682 = vmatmul.mubr.msk.bf16.gmra.mrb[56].mxu1 %vm274_vm0, %v2897_v49 }
 0x30c   :  { %2685 = vmatprep.mubr.msk.bf16.mxu1 %vm274_vm0, %v2898_v50 }
 0x313   :  { %2686 = vmatmul.mubr.msk.bf16.gmra.mrb[60].mxu1 %vm274_vm0, %v2899_v51 }
 0x314   :  { %2689 = vmatprep.mubr.msk.bf16.mxu1 %vm274_vm0, %v2900_v52 }
 0x31b   :  { %2690 = vmatmul.mubr.msk.bf16.gmra.mrb[64].mxu1 %vm274_vm0, %v2901_v53 }
 0x31c   :  { %2693 = vmatprep.mubr.msk.bf16.mxu1 %vm274_vm0, %v2902_v54 }
 0x323   :  { %2694 = vmatmul.mubr.msk.bf16.gmra.mrb[68].mxu1 %vm274_vm0, %v2903_v55 }
 0x324   :  { %2697 = vmatprep.mubr.msk.bf16.mxu1 %vm274_vm0, %v2904_v56  ;;  %v2922_v56 = vld [vmem:[#allocation2 + $0x170] sm:$0xff]  }
 0x32b   :  { %2698 = vmatmul.mubr.msk.bf16.gmra.mrb[72].mxu1 %vm274_vm0, %v2905_v57 }
 0x32c   :  { %2701 = vmatprep.mubr.msk.bf16.mxu1 %vm274_vm0, %v2906_v58 }
 0x333   :  { %2702 = vmatmul.mubr.msk.bf16.gmra.mrb[76].mxu1 %vm274_vm0, %v2907_v59 }
 0x3ce   :  { %v2675_v1 = vpop.f32.mrb[48].mxu1 }
 0x3cf   :  { %v1582_v2 = vadd.f32 %v2675_v1, %v3338_v0  ;;  %v1449_v3 = vpop.f32.mrb[49].mxu1 }
 0x3d0   :  { %v1580_v4 = vadd.f32 %v3338_v0, %v1449_v3  ;;  %v2676_v5 = vpop.f32.mrb[50].mxu1 }
 0x3d1   :  { %v1583_v6 = vadd.f32 %v2676_v5, %v3338_v0  ;;  %v1452_v7 = vpop.f32.mrb[51].mxu1  ;;  %v1614_v9 = vmax.f32 %v1582_v2, 0.0 }
 0x3d2   :  { %v1581_v8 = vadd.f32 %v3338_v0, %v1452_v7  ;;  %v1612_v11 = vmax.f32 %v1580_v4, 0.0 }
 0x3d3   :  { %v1615_v10 = vmax.f32 %v1583_v6, 0.0 }
 0x3d4   :  { %v1613_v12 = vmax.f32 %v1581_v8, 0.0 }
 0x3d5   :  { %v1645_v13 = vpack.c.bf16 %v1615_v10, %v1614_v9 }
 0x3d6   :  { %v1644_v14 = vpack.c.bf16 %v1613_v12, %v1612_v11  ;;  %v2679_v15 = vpop.f32.mrb[52].mxu1 }
 0x3d7   :  { %v1586_v16 = vadd.f32 %v2679_v15, %v3338_v0  ;;  %v1465_v17 = vpop.f32.mrb[53].mxu1 }
 0x3d8   :  { %v1584_v20 = vadd.f32 %v3338_v0, %v1465_v17  ;;  %v2680_v28 = vpop.f32.mrb[54].mxu1  ;;  %2721 = vmatprep.mubr.bf16.mxu0 %v1644_v14 }
 0x3d9   :  { %v1587_v21 = vadd.f32 %v2680_v28, %v3338_v0  ;;  %v1468_v34 = vpop.f32.mrb[55].mxu1  ;;  %2722 = vmatmul.mubr.bf16.vlgmr.msra.gmra.mrb[48].mxu0 %v1645_v13  ;;  %v1618_v23 = vmax.f32 %v1586_v16, 0.0 }
 0x3da   :  { %v1585_v22 = vadd.f32 %v3338_v0, %v1468_v34  ;;  %2754 = vmatpush3.bf16.msra.mxu0 %v2916_v62  ;;  %v1616_v63 = vmax.f32 %v1584_v20, 0.0 }
 0x3db   :  { %v1619_v25 = vmax.f32 %v1587_v21, 0.0  ;;  %2755 = vmatprep.subr.bf16.mxu0 %v2917_v18 }
 0x3dc   :  { %v1617_v24 = vmax.f32 %v1585_v22, 0.0 }
 0x3dd   :  { %v1647_v26 = vpack.c.bf16 %v1619_v25, %v1618_v23 }
 0x3de   :  { %v1646_v27 = vpack.c.bf16 %v1617_v24, %v1616_v63  ;;  %v2683_v29 = vpop.f32.mrb[56].mxu1  ;;  %2756 = vmatpush3.bf16.msra.mxu0 %v2917_v18 }
 0x3df   :  { %v1590_v30 = vadd.f32 %v2683_v29, %v3338_v0  ;;  %v1481_v31 = vpop.f32.mrb[57].mxu1  ;;  %2757 = vmatprep.subr.bf16.mxu0 %v2918_v60 }
 0x3e0   :  { %v1588_v33 = vadd.f32 %v3338_v0, %v1481_v31  ;;  %v2684_v35 = vpop.f32.mrb[58].mxu1  ;;  %2725 = vmatprep.mubr.bf16.mxu0 %v1646_v27 }
 0x3e1   :  { %v1591_v36 = vadd.f32 %v2684_v35, %v3338_v0  ;;  %v1484_v37 = vpop.f32.mrb[59].mxu1  ;;  %2726 = vmatmul.mubr.bf16.gmra.mrb[52].mxu0 %v1647_v26  ;;  %v1622_v39 = vmax.f32 %v1590_v30, 0.0 }
 0x3e2   :  { %v1589_v38 = vadd.f32 %v3338_v0, %v1484_v37  ;;  %2758 = vmatpush3.bf16.msra.mxu0 %v2918_v60  ;;  %v1620_v42 = vmax.f32 %v1588_v33, 0.0 }
 0x3e3   :  { %v1623_v40 = vmax.f32 %v1591_v36, 0.0  ;;  %2759 = vmatprep.subr.bf16.mxu0 %v2919_v32 }
 0x3e4   :  { %v1621_v43 = vmax.f32 %v1589_v38, 0.0 }
 0x3e5   :  { %v1649_v44 = vpack.c.bf16 %v1623_v40, %v1622_v39 }
 0x3e6   :  { %v1648_v45 = vpack.c.bf16 %v1621_v43, %v1620_v42  ;;  %v2687_v19 = vpop.f32.mrb[60].mxu1  ;;  %2760 = vmatpush3.bf16.msra.mxu0 %v2919_v32 }
 0x3e7   :  { %v1594_v46 = vadd.f32 %v2687_v19, %v3338_v0  ;;  %v1497_v47 = vpop.f32.mrb[61].mxu1  ;;  %2761 = vmatprep.subr.bf16.mxu0 %v2920_v41 }
 0x3e8   :  { %v1592_v49 = vadd.f32 %v3338_v0, %v1497_v47  ;;  %v2688_v50 = vpop.f32.mrb[62].mxu1  ;;  %2729 = vmatprep.mubr.bf16.mxu0 %v1648_v45 }
 0x3e9   :  { %v1595_v51 = vadd.f32 %v2688_v50, %v3338_v0  ;;  %v1500_v52 = vpop.f32.mrb[63].mxu1  ;;  %2730 = vmatmul.mubr.bf16.gmra.mrb[56].mxu0 %v1649_v44  ;;  %v1626_v54 = vmax.f32 %v1594_v46, 0.0 }
 0x3ea   :  { %v1593_v53 = vadd.f32 %v3338_v0, %v1500_v52  ;;  %2762 = vmatpush3.bf16.msra.mxu0 %v2920_v41  ;;  %v1624_v57 = vmax.f32 %v1592_v49, 0.0 }
 0x3eb   :  { %v1627_v55 = vmax.f32 %v1595_v51, 0.0  ;;  %2763 = vmatprep.subr.bf16.mxu0 %v2921_v48 }
 0x3ec   :  { %v1625_v58 = vmax.f32 %v1593_v53, 0.0 }
 0x3ed   :  { %v1651_v59 = vpack.c.bf16 %v1627_v55, %v1626_v54  ;;  %v2923_v54 = vld [vmem:[#allocation2 + $0x178] sm:$0xff]   ;;  %v3375_v55 = vld [vmem:[%s3545_s3 + $0x4] ss:$0 sm:$0xff] }
 0x3ee   :  { %v1650_v61 = vpack.c.bf16 %v1625_v58, %v1624_v57  ;;  %v2691_v62 = vpop.f32.mrb[64].mxu1  ;;  %2764 = vmatpush3.bf16.msra.mxu0 %v2921_v48 }
 0x3ef   :  { %v1598_v1 = vadd.f32 %v2691_v62, %v3338_v0  ;;  %v1513_v2 = vpop.f32.mrb[65].mxu1  ;;  %2765 = vmatprep.subr.bf16.mxu0 %v2922_v56 }
 0x3f0   :  { %v1596_v3 = vadd.f32 %v3338_v0, %v1513_v2  ;;  %v2692_v4 = vpop.f32.mrb[66].mxu1  ;;  %2733 = vmatprep.mubr.bf16.mxu0 %v1650_v61 }
 0x3f1   :  { %v1599_v5 = vadd.f32 %v2692_v4, %v3338_v0  ;;  %v1516_v6 = vpop.f32.mrb[67].mxu1  ;;  %2734 = vmatmul.mubr.bf16.gmra.mrb[60].mxu0 %v1651_v59  ;;  %v1630_v8 = vmax.f32 %v1598_v1, 0.0 }
 0x3f2   :  { %v1597_v7 = vadd.f32 %v3338_v0, %v1516_v6  ;;  %2766 = vmatpush3.bf16.msra.mxu0 %v2922_v56  ;;  %v1628_v10 = vmax.f32 %v1596_v3, 0.0 }
 0x3f3   :  { %v1631_v9 = vmax.f32 %v1599_v5, 0.0  ;;  %2767 = vmatprep.subr.bf16.mxu0 %v2923_v54 }
 0x3f4   :  { %v1629_v11 = vmax.f32 %v1597_v7, 0.0 }
 0x3f5   :  { %v1653_v12 = vpack.c.bf16 %v1631_v9, %v1630_v8 }
 0x3f6   :  { %v1652_v13 = vpack.c.bf16 %v1629_v11, %v1628_v10  ;;  %v2695_v14 = vpop.f32.mrb[68].mxu1  ;;  %2768 = vmatpush3.bf16.msra.mxu0 %v2923_v54 }
 0x3f7   :  { %v1602_v15 = vadd.f32 %v2695_v14, %v3338_v0  ;;  %v1529_v16 = vpop.f32.mrb[69].mxu1 }
 0x3f8   :  { %v1600_v17 = vadd.f32 %v3338_v0, %v1529_v16  ;;  %v2696_v18 = vpop.f32.mrb[70].mxu1  ;;  %2737 = vmatprep.mubr.bf16.mxu0 %v1652_v13 }
 0x3f9   :  { %v1603_v20 = vadd.f32 %v2696_v18, %v3338_v0  ;;  %v1532_v28 = vpop.f32.mrb[71].mxu1  ;;  %2738 = vmatmul.mubr.bf16.gmra.mrb[64].mxu0 %v1653_v12  ;;  %v1634_v34 = vmax.f32 %v1602_v15, 0.0 }
 0x3fa   :  { %v1601_v21 = vadd.f32 %v3338_v0, %v1532_v28  ;;  %v1632_v23 = vmax.f32 %v1600_v17, 0.0 }
 0x3fb   :  { %v1635_v22 = vmax.f32 %v1603_v20, 0.0 }
 0x3fc   :  { %v1633_v25 = vmax.f32 %v1601_v21, 0.0 }
 0x3fd   :  { %v1655_v60 = vpack.c.bf16 %v1635_v22, %v1634_v34 }
 0x3fe   :  { %v1654_v63 = vpack.c.bf16 %v1633_v25, %v1632_v23  ;;  %v2699_v24 = vpop.f32.mrb[72].mxu1 }
 0x3ff   :  { %v1606_v26 = vadd.f32 %v2699_v24, %v3338_v0  ;;  %v1545_v27 = vpop.f32.mrb[73].mxu1 }
 0x400   :  { %v1604_v29 = vadd.f32 %v3338_v0, %v1545_v27  ;;  %v2700_v30 = vpop.f32.mrb[74].mxu1  ;;  %2741 = vmatprep.mubr.bf16.mxu0 %v1654_v63 }
 0x401   :  { %v1607_v31 = vadd.f32 %v2700_v30, %v3338_v0  ;;  %v1548_v32 = vpop.f32.mrb[75].mxu1  ;;  %2742 = vmatmul.mubr.bf16.gmra.mrb[68].mxu0 %v1655_v60  ;;  %v1638_v35 = vmax.f32 %v1606_v26, 0.0 }
 0x402   :  { %v1605_v33 = vadd.f32 %v3338_v0, %v1548_v32  ;;  %v1636_v37 = vmax.f32 %v1604_v29, 0.0 }
 0x403   :  { %v1639_v36 = vmax.f32 %v1607_v31, 0.0 }
 0x404   :  { %v1637_v38 = vmax.f32 %v1605_v33, 0.0 }
 0x405   :  { %v1657_v39 = vpack.c.bf16 %v1639_v36, %v1638_v35 }
 0x406   :  { %v1656_v40 = vpack.c.bf16 %v1637_v38, %v1636_v37  ;;  %v2703_v41 = vpop.f32.mrb[76].mxu1 }
 0x407   :  { %v1610_v42 = vadd.f32 %v2703_v41, %v3338_v0  ;;  %v1561_v43 = vpop.f32.mrb[77].mxu1 }
 0x408   :  { %v1608_v44 = vadd.f32 %v3338_v0, %v1561_v43  ;;  %v2704_v45 = vpop.f32.mrb[78].mxu1  ;;  %2745 = vmatprep.mubr.bf16.mxu0 %v1656_v40 }
 0x409   :  { %v1611_v19 = vadd.f32 %v2704_v45, %v3338_v0  ;;  %v1564_v46 = vpop.f32.mrb[79].mxu1  ;;  %2746 = vmatmul.mubr.bf16.gmra.mrb[72].mxu0 %v1657_v39  ;;  %v1642_v48 = vmax.f32 %v1610_v42, 0.0 }
 0x40a   :  { %v1609_v47 = vadd.f32 %v3338_v0, %v1564_v46  ;;  %v1640_v50 = vmax.f32 %v1608_v44, 0.0 }
 0x40b   :  { %v1643_v49 = vmax.f32 %v1611_v19, 0.0 }
 0x40c   :  { %v1641_v51 = vmax.f32 %v1609_v47, 0.0 }
 0x40d   :  { %v1659_v52 = vpack.c.bf16 %v1643_v49, %v1642_v48 }
 0x40e   :  { %v1658_v53 = vpack.c.bf16 %v1641_v51, %v1640_v50 }
 0x410   :  { %2749 = vmatprep.mubr.bf16.mxu0 %v1658_v53 }
 0x411   :  { %2750 = vmatmul.mubr.bf16.gmra.mrb[76].mxu0 %v1659_v52 }
 0x4ac   :  { %v2723_v56 = vpop.f32.mrb[48].mxu0 }
 0x4ad   :  { %v1755_v57 = vadd.f32 %v2723_v56, %v3375_v55  ;;  %v1746_v0 = vpop.f32.mrb[49].mxu0 }
 0x4ae   :  { %v1747_v58 = vadd.f32 %v3375_v55, %v1746_v0  ;;  %v2724_v59 = vpop.f32.mrb[50].mxu0 }
 0x4af   :  { %v1758_v61 = vadd.f32 %v2724_v59, %v3375_v55  ;;  %v1749_v62 = vpop.f32.mrb[51].mxu0  ;;  %v1875_v2 = vmax.f32 %v1755_v57, 0.0 }
 0x4b0   :  { %v1750_v1 = vadd.f32 %v3375_v55, %v1749_v62  ;;  %v1873_v4 = vmax.f32 %v1747_v58, 0.0 }
 0x4b1   :  { %v1876_v3 = vmax.f32 %v1758_v61, 0.0 }
 0x4b2   :  { %v1874_v5 = vmax.f32 %v1750_v1, 0.0 }
 0x4b3   :  { %v1906_v6 = vpack.c.bf16 %v1876_v3, %v1875_v2 }
 0x4b4   :  { %v1905_v7 = vpack.c.bf16 %v1874_v5, %v1873_v4  ;;  %v2727_v8 = vpop.f32.mrb[52].mxu0 }
 0x4b5   :  { %v1771_v9 = vadd.f32 %v2727_v8, %v3375_v55  ;;  %v1762_v10 = vpop.f32.mrb[53].mxu0 }
 0x4b6   :  { %v1763_v11 = vadd.f32 %v3375_v55, %v1762_v10  ;;  %v2728_v12 = vpop.f32.mrb[54].mxu0  ;;  %2769 = vmatprep.mubr.bf16.mxu0 %v1905_v7 }
 0x4b7   :  { %v1774_v13 = vadd.f32 %v2728_v12, %v3375_v55  ;;  %v1765_v14 = vpop.f32.mrb[55].mxu0  ;;  %2770 = vmatmul.mubr.bf16.vlgmr.msra.gmra.mrb[80].mxu0 %v1906_v6  ;;  %v1879_v16 = vmax.f32 %v1771_v9, 0.0 }
 0x4b8   :  { %v1766_v15 = vadd.f32 %v3375_v55, %v1765_v14  ;;  %v1877_v18 = vmax.f32 %v1763_v11, 0.0 }
 0x4b9   :  { %v1880_v17 = vmax.f32 %v1774_v13, 0.0 }
 0x4ba   :  { %v1878_v20 = vmax.f32 %v1766_v15, 0.0 }
 0x4bb   :  { %v1908_v28 = vpack.c.bf16 %v1880_v17, %v1879_v16 }
 0x4bc   :  { %v1907_v21 = vpack.c.bf16 %v1878_v20, %v1877_v18  ;;  %v2731_v34 = vpop.f32.mrb[56].mxu0 }
 0x4bd   :  { %v1787_v22 = vadd.f32 %v2731_v34, %v3375_v55  ;;  %v1778_v23 = vpop.f32.mrb[57].mxu0 }
 0x4be   :  { %v1779_v25 = vadd.f32 %v3375_v55, %v1778_v23  ;;  %v2732_v60 = vpop.f32.mrb[58].mxu0  ;;  %2773 = vmatprep.mubr.bf16.mxu0 %v1907_v21 }
 0x4bf   :  { %v1790_v63 = vadd.f32 %v2732_v60, %v3375_v55  ;;  %v1781_v24 = vpop.f32.mrb[59].mxu0  ;;  %2774 = vmatmul.mubr.bf16.gmra.mrb[84].mxu0 %v1908_v28  ;;  %v1883_v27 = vmax.f32 %v1787_v22, 0.0 }
 0x4c0   :  { %v1782_v26 = vadd.f32 %v3375_v55, %v1781_v24  ;;  %v1881_v30 = vmax.f32 %v1779_v25, 0.0 }
 0x4c1   :  { %v1884_v29 = vmax.f32 %v1790_v63, 0.0 }
 0x4c2   :  { %v1882_v31 = vmax.f32 %v1782_v26, 0.0 }
 0x4c3   :  { %v1910_v32 = vpack.c.bf16 %v1884_v29, %v1883_v27 }
 0x4c4   :  { %v1909_v33 = vpack.c.bf16 %v1882_v31, %v1881_v30  ;;  %v2735_v35 = vpop.f32.mrb[60].mxu0 }
 0x4c5   :  { %v1803_v36 = vadd.f32 %v2735_v35, %v3375_v55  ;;  %v1794_v37 = vpop.f32.mrb[61].mxu0 }
 0x4c6   :  { %v1795_v38 = vadd.f32 %v3375_v55, %v1794_v37  ;;  %v2736_v39 = vpop.f32.mrb[62].mxu0  ;;  %2777 = vmatprep.mubr.bf16.mxu0 %v1909_v33 }
 0x4c7   :  { %v1806_v40 = vadd.f32 %v2736_v39, %v3375_v55  ;;  %v1797_v41 = vpop.f32.mrb[63].mxu0  ;;  %2778 = vmatmul.mubr.bf16.gmra.mrb[88].mxu0 %v1910_v32  ;;  %v1887_v43 = vmax.f32 %v1803_v36, 0.0 }
 0x4c8   :  { %v1798_v42 = vadd.f32 %v3375_v55, %v1797_v41  ;;  %v1885_v45 = vmax.f32 %v1795_v38, 0.0 }
 0x4c9   :  { %v1888_v44 = vmax.f32 %v1806_v40, 0.0 }
 0x4ca   :  { %v1886_v19 = vmax.f32 %v1798_v42, 0.0  ;;  %v3412_v42 = vld [vmem:[%s3545_s3 + $0x5] ss:$0 sm:$0xff] }
 0x4cb   :  { %v1912_v46 = vpack.c.bf16 %v1888_v44, %v1887_v43 }
 0x4cc   :  { %v1911_v47 = vpack.c.bf16 %v1886_v19, %v1885_v45  ;;  %v2739_v48 = vpop.f32.mrb[64].mxu0 }
 0x4cd   :  { %v1819_v49 = vadd.f32 %v2739_v48, %v3375_v55  ;;  %v1810_v50 = vpop.f32.mrb[65].mxu0 }
 0x4ce   :  { %v1811_v51 = vadd.f32 %v3375_v55, %v1810_v50  ;;  %v2740_v52 = vpop.f32.mrb[66].mxu0  ;;  %2781 = vmatprep.mubr.bf16.mxu0 %v1911_v47 }
 0x4cf   :  { %v1822_v53 = vadd.f32 %v2740_v52, %v3375_v55  ;;  %v1813_v54 = vpop.f32.mrb[67].mxu0  ;;  %2782 = vmatmul.mubr.bf16.gmra.mrb[92].mxu0 %v1912_v46  ;;  %v1891_v57 = vmax.f32 %v1819_v49, 0.0 }
 0x4d0   :  { %v1814_v56 = vadd.f32 %v3375_v55, %v1813_v54  ;;  %v1889_v58 = vmax.f32 %v1811_v51, 0.0 }
 0x4d1   :  { %v1892_v0 = vmax.f32 %v1822_v53, 0.0 }
 0x4d2   :  { %v1890_v59 = vmax.f32 %v1814_v56, 0.0 }
 0x4d3   :  { %v1914_v61 = vpack.c.bf16 %v1892_v0, %v1891_v57 }
 0x4d4   :  { %v1913_v62 = vpack.c.bf16 %v1890_v59, %v1889_v58  ;;  %v2743_v1 = vpop.f32.mrb[68].mxu0 }
 0x4d5   :  { %v1835_v2 = vadd.f32 %v2743_v1, %v3375_v55  ;;  %v1826_v3 = vpop.f32.mrb[69].mxu0 }
 0x4d6   :  { %v1827_v4 = vadd.f32 %v3375_v55, %v1826_v3  ;;  %v2744_v5 = vpop.f32.mrb[70].mxu0  ;;  %2785 = vmatprep.mubr.bf16.mxu0 %v1913_v62 }
 0x4d7   :  { %v1838_v6 = vadd.f32 %v2744_v5, %v3375_v55  ;;  %v1829_v7 = vpop.f32.mrb[71].mxu0  ;;  %2786 = vmatmul.mubr.bf16.gmra.mrb[96].mxu0 %v1914_v61  ;;  %v1895_v9 = vmax.f32 %v1835_v2, 0.0 }
 0x4d8   :  { %v1830_v8 = vadd.f32 %v3375_v55, %v1829_v7  ;;  %v1893_v11 = vmax.f32 %v1827_v4, 0.0 }
 0x4d9   :  { %v1896_v10 = vmax.f32 %v1838_v6, 0.0 }
 0x4da   :  { %v1894_v12 = vmax.f32 %v1830_v8, 0.0 }
 0x4db   :  { %v1916_v13 = vpack.c.bf16 %v1896_v10, %v1895_v9 }
 0x4dc   :  { %v1915_v14 = vpack.c.bf16 %v1894_v12, %v1893_v11  ;;  %v2747_v15 = vpop.f32.mrb[72].mxu0 }
 0x4dd   :  { %v1851_v16 = vadd.f32 %v2747_v15, %v3375_v55  ;;  %v1842_v17 = vpop.f32.mrb[73].mxu0 }
 0x4de   :  { %v1843_v18 = vadd.f32 %v3375_v55, %v1842_v17  ;;  %v2748_v20 = vpop.f32.mrb[74].mxu0  ;;  %2789 = vmatprep.mubr.bf16.mxu0 %v1915_v14 }
 0x4df   :  { %v1854_v28 = vadd.f32 %v2748_v20, %v3375_v55  ;;  %v1845_v21 = vpop.f32.mrb[75].mxu0  ;;  %2790 = vmatmul.mubr.bf16.gmra.mrb[100].mxu0 %v1916_v13  ;;  %v1899_v22 = vmax.f32 %v1851_v16, 0.0 }
 0x4e0   :  { %v1846_v34 = vadd.f32 %v3375_v55, %v1845_v21  ;;  %v1897_v25 = vmax.f32 %v1843_v18, 0.0 }
 0x4e1   :  { %v1900_v23 = vmax.f32 %v1854_v28, 0.0 }
 0x4e2   :  { %v1898_v60 = vmax.f32 %v1846_v34, 0.0 }
 0x4e3   :  { %v1918_v63 = vpack.c.bf16 %v1900_v23, %v1899_v22 }
 0x4e4   :  { %v1917_v24 = vpack.c.bf16 %v1898_v60, %v1897_v25  ;;  %v2751_v26 = vpop.f32.mrb[76].mxu0 }
 0x4e5   :  { %v1867_v27 = vadd.f32 %v2751_v26, %v3375_v55  ;;  %v1858_v29 = vpop.f32.mrb[77].mxu0 }
 0x4e6   :  { %v1859_v30 = vadd.f32 %v3375_v55, %v1858_v29  ;;  %v2752_v31 = vpop.f32.mrb[78].mxu0  ;;  %2793 = vmatprep.mubr.bf16.mxu0 %v1917_v24 }
 0x4e7   :  { %v1870_v32 = vadd.f32 %v2752_v31, %v3375_v55  ;;  %v1861_v33 = vpop.f32.mrb[79].mxu0  ;;  %2794 = vmatmul.mubr.bf16.gmra.mrb[104].mxu0 %v1918_v63  ;;  %v1903_v36 = vmax.f32 %v1867_v27, 0.0 }
 0x4e8   :  { %v1862_v35 = vadd.f32 %v3375_v55, %v1861_v33  ;;  %v1901_v38 = vmax.f32 %v1859_v30, 0.0 }
 0x4e9   :  { %v1904_v37 = vmax.f32 %v1870_v32, 0.0 }
 0x4ea   :  { %v1902_v39 = vmax.f32 %v1862_v35, 0.0 }
 0x4eb   :  { %v1920_v40 = vpack.c.bf16 %v1904_v37, %v1903_v36 }
 0x4ec   :  { %v1919_v41 = vpack.c.bf16 %v1902_v39, %v1901_v38 }
 0x4ee   :  { %2797 = vmatprep.mubr.bf16.mxu0 %v1919_v41 }
 0x4ef   :  { %2798 = vmatmul.mubr.bf16.gmra.mrb[108].mxu0 %v1920_v40 }
 0x58a   :  { %v2771_v43 = vpop.f32.mrb[80].mxu0 }
 0x58b   :  { %v2016_v44 = vadd.f32 %v2771_v43, %v3412_v42  ;;  %v2007_v45 = vpop.f32.mrb[81].mxu0 }
 0x58c   :  { %v2008_v19 = vadd.f32 %v3412_v42, %v2007_v45  ;;  %v2772_v55 = vpop.f32.mrb[82].mxu0 }
 0x58d   :  { %2168 = vst [vmem:[%s3546_s4 + $0x28] sm:$0xff] %v2016_v44  ;;  %v2019_v46 = vadd.f32 %v2772_v55, %v3412_v42  ;;  %v2010_v47 = vpop.f32.mrb[83].mxu0 }
 0x58e   :  { %2166 = vst [vmem:[%s3546_s4 + $0x8] sm:$0xff] %v2008_v19  ;;  %v2011_v48 = vadd.f32 %v3412_v42, %v2010_v47 }
 0x58f   :  { %2169 = vst [vmem:[%s3546_s4 + $0x38] sm:$0xff] %v2019_v46 }
 0x590   :  { %2167 = vst [vmem:[%s3546_s4 + $0x18] sm:$0xff] %v2011_v48 }
 0x592   :  { %v2775_v49 = vpop.f32.mrb[84].mxu0 }
 0x593   :  { %v2032_v50 = vadd.f32 %v2775_v49, %v3412_v42  ;;  %v2023_v51 = vpop.f32.mrb[85].mxu0 }
 0x594   :  { %v2024_v52 = vadd.f32 %v3412_v42, %v2023_v51  ;;  %v2776_v53 = vpop.f32.mrb[86].mxu0 }
 0x595   :  { %2172 = vst [vmem:[%s3546_s4 + $0x68] sm:$0xff] %v2032_v50  ;;  %v2035_v54 = vadd.f32 %v2776_v53, %v3412_v42  ;;  %v2026_v56 = vpop.f32.mrb[87].mxu0 }
 0x596   :  { %2170 = vst [vmem:[%s3546_s4 + $0x48] sm:$0xff] %v2024_v52  ;;  %v2027_v57 = vadd.f32 %v3412_v42, %v2026_v56 }
 0x597   :  { %2173 = vst [vmem:[%s3546_s4 + $0x78] sm:$0xff] %v2035_v54 }
 0x598   :  { %2171 = vst [vmem:[%s3546_s4 + $0x58] sm:$0xff] %v2027_v57 }
 0x59a   :  { %v2779_v0 = vpop.f32.mrb[88].mxu0 }
 0x59b   :  { %v2048_v58 = vadd.f32 %v2779_v0, %v3412_v42  ;;  %v2039_v59 = vpop.f32.mrb[89].mxu0 }
 0x59c   :  { %v2040_v61 = vadd.f32 %v3412_v42, %v2039_v59  ;;  %v2780_v62 = vpop.f32.mrb[90].mxu0 }
 0x59d   :  { %2176 = vst [vmem:[%s3546_s4 + $0xa8] sm:$0xff] %v2048_v58  ;;  %v2051_v1 = vadd.f32 %v2780_v62, %v3412_v42  ;;  %v2042_v2 = vpop.f32.mrb[91].mxu0 }
 0x59e   :  { %2174 = vst [vmem:[%s3546_s4 + $0x88] sm:$0xff] %v2040_v61  ;;  %v2043_v3 = vadd.f32 %v3412_v42, %v2042_v2 }
 0x59f   :  { %2177 = vst [vmem:[%s3546_s4 + $0xb8] sm:$0xff] %v2051_v1 }
 0x5a0   :  { %2175 = vst [vmem:[%s3546_s4 + $0x98] sm:$0xff] %v2043_v3 }
 0x5a2   :  { %v2783_v4 = vpop.f32.mrb[92].mxu0 }
 0x5a3   :  { %v2064_v5 = vadd.f32 %v2783_v4, %v3412_v42  ;;  %v2055_v6 = vpop.f32.mrb[93].mxu0 }
 0x5a4   :  { %v2056_v7 = vadd.f32 %v3412_v42, %v2055_v6  ;;  %v2784_v8 = vpop.f32.mrb[94].mxu0 }
 0x5a5   :  { %2180 = vst [vmem:[%s3546_s4 + $0xe8] sm:$0xff] %v2064_v5  ;;  %v2067_v9 = vadd.f32 %v2784_v8, %v3412_v42  ;;  %v2058_v10 = vpop.f32.mrb[95].mxu0 }
 0x5a6   :  { %2178 = vst [vmem:[%s3546_s4 + $0xc8] sm:$0xff] %v2056_v7  ;;  %v2059_v11 = vadd.f32 %v3412_v42, %v2058_v10 }
 0x5a7   :  { %2181 = vst [vmem:[%s3546_s4 + $0xf8] sm:$0xff] %v2067_v9 }
 0x5a8   :  { %2179 = vst [vmem:[%s3546_s4 + $0xd8] sm:$0xff] %v2059_v11 }
 0x5aa   :  { %v2787_v12 = vpop.f32.mrb[96].mxu0 }
 0x5ab   :  { %v2080_v13 = vadd.f32 %v2787_v12, %v3412_v42  ;;  %v2071_v14 = vpop.f32.mrb[97].mxu0 }
 0x5ac   :  { %v2072_v15 = vadd.f32 %v3412_v42, %v2071_v14  ;;  %v2788_v16 = vpop.f32.mrb[98].mxu0 }
 0x5ad   :  { %2184 = vst [vmem:[%s3546_s4 + $0x128] sm:$0xff] %v2080_v13  ;;  %v2083_v17 = vadd.f32 %v2788_v16, %v3412_v42  ;;  %v2074_v18 = vpop.f32.mrb[99].mxu0 }
 0x5ae   :  { %2182 = vst [vmem:[%s3546_s4 + $0x108] sm:$0xff] %v2072_v15  ;;  %v2075_v20 = vadd.f32 %v3412_v42, %v2074_v18 }
 0x5af   :  { %2185 = vst [vmem:[%s3546_s4 + $0x138] sm:$0xff] %v2083_v17 }
 0x5b0   :  { %2183 = vst [vmem:[%s3546_s4 + $0x118] sm:$0xff] %v2075_v20 }
 0x5b2   :  { %v2791_v28 = vpop.f32.mrb[100].mxu0 }
 0x5b3   :  { %v2096_v21 = vadd.f32 %v2791_v28, %v3412_v42  ;;  %v2087_v34 = vpop.f32.mrb[101].mxu0 }
 0x5b4   :  { %v2088_v22 = vadd.f32 %v3412_v42, %v2087_v34  ;;  %v2792_v23 = vpop.f32.mrb[102].mxu0 }
 0x5b5   :  { %2188 = vst [vmem:[%s3546_s4 + $0x168] sm:$0xff] %v2096_v21  ;;  %v2099_v25 = vadd.f32 %v2792_v23, %v3412_v42  ;;  %v2090_v60 = vpop.f32.mrb[103].mxu0 }
 0x5b6   :  { %2186 = vst [vmem:[%s3546_s4 + $0x148] sm:$0xff] %v2088_v22  ;;  %v2091_v63 = vadd.f32 %v3412_v42, %v2090_v60 }
 0x5b7   :  { %2189 = vst [vmem:[%s3546_s4 + $0x178] sm:$0xff] %v2099_v25 }
 0x5b8   :  { %2187 = vst [vmem:[%s3546_s4 + $0x158] sm:$0xff] %v2091_v63 }
 0x5ba   :  { %v2795_v24 = vpop.f32.mrb[104].mxu0 }
 0x5bb   :  { %v2112_v26 = vadd.f32 %v2795_v24, %v3412_v42  ;;  %v2103_v27 = vpop.f32.mrb[105].mxu0 }
 0x5bc   :  { %v2104_v29 = vadd.f32 %v3412_v42, %v2103_v27  ;;  %v2796_v30 = vpop.f32.mrb[106].mxu0 }
 0x5bd   :  { %2192 = vst [vmem:[%s3546_s4 + $0x1a8] sm:$0xff] %v2112_v26  ;;  %v2115_v31 = vadd.f32 %v2796_v30, %v3412_v42  ;;  %v2106_v32 = vpop.f32.mrb[107].mxu0 }
 0x5be   :  { %2190 = vst [vmem:[%s3546_s4 + $0x188] sm:$0xff] %v2104_v29  ;;  %v2107_v33 = vadd.f32 %v3412_v42, %v2106_v32 }
 0x5bf   :  { %2193 = vst [vmem:[%s3546_s4 + $0x1b8] sm:$0xff] %v2115_v31 }
 0x5c0   :  { %2191 = vst [vmem:[%s3546_s4 + $0x198] sm:$0xff] %v2107_v33 }
 0x5c2   :  { %v2799_v35 = vpop.f32.mrb[108].mxu0 }
 0x5c3   :  { %v2128_v36 = vadd.f32 %v2799_v35, %v3412_v42  ;;  %v2119_v37 = vpop.f32.mrb[109].mxu0 }
 0x5c4   :  { %v2120_v38 = vadd.f32 %v3412_v42, %v2119_v37  ;;  %v2800_v39 = vpop.f32.mrb[110].mxu0 }
 0x5c5   :  { %2196 = vst [vmem:[%s3546_s4 + $0x1e8] sm:$0xff] %v2128_v36  ;;  %v2131_v40 = vadd.f32 %v2800_v39, %v3412_v42  ;;  %v2122_v41 = vpop.f32.mrb[111].mxu0 }
 0x5c6   :  { %2194 = vst [vmem:[%s3546_s4 + $0x1c8] sm:$0xff] %v2120_v38  ;;  %v2123_v43 = vadd.f32 %v3412_v42, %v2122_v41 }
 0x5c7   :  { %2197 = vst [vmem:[%s3546_s4 + $0x1f8] sm:$0xff] %v2131_v40 }
 0x5c8   :  { %2195 = vst [vmem:[%s3546_s4 + $0x1d8] sm:$0xff] %v2123_v43 }
 0x5c9   :  { %2202 = vsyncpa [#allocation3], 1 }

</bundles_post_ra>
